<compile_context>
chip_gen: v6e
topology: v6e:2x2x1
jax: 0.10.0
libtpu: 0.0.40
codegen_flags: <defaults>
</compile_context>

<pallas_src>
import functools

import jax
import jax.numpy as jnp
from jax import lax
from jax.experimental import pallas as pl
from jax.experimental.pallas import tpu as pltpu


# ---------------------------------------------------------------------------
# Fused ResBlock kernel: one grid step == one batch element, everything in VMEM.
# ---------------------------------------------------------------------------
def _resblock_kernel(gamma_ref, x_ref, wq_ref, bq_ref, wk_ref, bk_ref, wv_ref, bv_ref,
                     w1_ref, b1_ref, w2_ref, b2_ref, out_ref, *, H, W):
    N = H * W
    x = x_ref[0].astype(jnp.float32)                                     # [C, N]

    # ------------------- Nonlocal (SAGAN-style) self-attention -------------------
    q = jnp.dot(wq_ref[...], x, preferred_element_type=jnp.float32) + bq_ref[...]   # [C8p, N]
    k = jnp.dot(wk_ref[...], x, preferred_element_type=jnp.float32) + bk_ref[...]   # [C8p, N]
    v = jnp.dot(wv_ref[...], x, preferred_element_type=jnp.float32) + bv_ref[...]   # [C,   N]

    # s[i, j] = <q[:, i], k[:, j]>  (no 1/sqrt(d) scaling -- matches the PyTorch module)
    # TODO(synk): flash-style KV tiling so the [N, N] scores never materialize at large H*W.
    s = jnp.dot(jnp.transpose(q), k, preferred_element_type=jnp.float32)             # [N, N]
    s = s - jnp.max(s, axis=-1, keepdims=True)
    e = jnp.exp(s)
    attn = e * pl.reciprocal(jnp.sum(e, axis=-1, keepdims=True), approx=True)         # softmax_j
    # o[c, i] = sum_j v[c, j] * attn[i, j]
    o = lax.dot_general(v, attn, (((1,), (1,)), ((), ())),
                        preferred_element_type=jnp.float32)                           # [C, N]
    xa = gamma_ref[0] * o + x                                                         # ResBlock residual

    # ------------- fused Conv2dBlock x2: 3x3 conv -> InstanceNorm [-> ReLU] -------------
    col = lax.broadcasted_iota(jnp.int32, (1, N), 1) % W                 # [1, N] column index
    not_left_edge = col > 0          # tap reads column w-1: invalid at w == 0
    not_right_edge = col < (W - 1)   # tap reads column w+1: invalid at w == W-1
    P = W + 1                        # halo width so every shifted slice stays in range

    def conv3x3(inp, w_ref, b_ref):
        """3x3 zero-padded conv as 9 accumulating MXU matmuls over lane-shifted views."""
        cin = inp.shape[0]
        cout = w_ref.shape[1]
        halo = jnp.zeros((cin, P), jnp.float32)
        xpad = jnp.concatenate([halo, inp, halo], axis=1)                # [Cin, N + 2P]
        acc = jnp.zeros((cout, N), jnp.float32)
        t = 0
        for dh in (-1, 0, 1):
            for dw in (-1, 0, 1):
                d = dh * W + dw
                tap = lax.slice(xpad, (0, P + d), (cin, P + d + N))      # inp[:, n+d], 0 outside
                if dw == -1:
                    tap = jnp.where(not_left_edge, tap, 0.0)
                elif dw == 1:
                    tap = jnp.where(not_right_edge, tap, 0.0)
                acc = acc + jnp.dot(w_ref[t], tap, preferred_element_type=jnp.float32)
                t += 1
        return acc + b_ref[...]                                          # [Cout, N]

    def instance_norm(y):
        # InstanceNorm2d (affine=False, eps=1e-5, biased variance over spatial positions)
        mean = jnp.mean(y, axis=1, keepdims=True)
        var = jnp.mean(jnp.square(y - mean), axis=1, keepdims=True)
        return (y - mean) * lax.rsqrt(var + 1e-5)

    h1 = jnp.maximum(instance_norm(conv3x3(xa, w1_ref, b1_ref)), 0.0)
    h2 = instance_norm(conv3x3(h1, w2_ref, b2_ref))

    out_ref[0] = (h2 + xa).astype(out_ref.dtype)


# ---------------------------------------------------------------------------
# Wrapper: takes / returns NCHW like PyTorch (only trivial reshapes, no transposes).
# ---------------------------------------------------------------------------
def res_block_forward(x_nchw, p):
    B, C, H, W = x_nchw.shape
    N = H * W
    C8 = p["wq"].shape[0]
    C8p = max(8, ((C8 + 7) // 8) * 8)   # pad Q/K projection rows (exact: padded rows contribute 0)

    def pad_rows(a, rows):
        return jnp.pad(a, ((0, rows - a.shape[0]),) + ((0, 0),) * (a.ndim - 1))

    def tap_major(w_oihw):              # [Cout, Cin, 3, 3] -> [9, Cout, Cin], tap index = kh*3+kw
        cout, cin = w_oihw.shape[:2]
        return jnp.transpose(w_oihw.reshape(cout, cin, 9), (2, 0, 1))

    wq = pad_rows(p["wq"], C8p)
    bq = pad_rows(p["bq"].reshape(C8, 1), C8p)
    wk = pad_rows(p["wk"], C8p)
    bk = pad_rows(p["bk"].reshape(C8, 1), C8p)
    wv = p["wv"]
    bv = p["bv"].reshape(C, 1)
    w1 = tap_major(p["w1"])
    b1 = p["b1"].reshape(C, 1)
    w2 = tap_major(p["w2"])
    b2 = p["b2"].reshape(C, 1)
    gamma = p["gamma"].reshape(1)

    x = x_nchw.reshape(B, C, N)         # NCHW kept as [B, C, N]; pure reshape, no data movement
    kern = functools.partial(_resblock_kernel, H=H, W=W)

    # TODO(synk): spatial tiling + two-pass InstanceNorm for resolutions where one batch element
    #             no longer fits in VMEM (this version targets small/medium H*W).
    out = pl.pallas_call(
        kern,
        out_shape=jax.ShapeDtypeStruct((B, C, N), x_nchw.dtype),
        grid=(B,),
        in_specs=[
            pl.BlockSpec(memory_space=pltpu.SMEM),            # gamma (scalar path)
            pl.BlockSpec((1, C, N), lambda b: (b, 0, 0)),     # x
            pl.BlockSpec((C8p, C), lambda b: (0, 0)),         # wq
            pl.BlockSpec((C8p, 1), lambda b: (0, 0)),         # bq
            pl.BlockSpec((C8p, C), lambda b: (0, 0)),         # wk
            pl.BlockSpec((C8p, 1), lambda b: (0, 0)),         # bk
            pl.BlockSpec((C, C), lambda b: (0, 0)),           # wv
            pl.BlockSpec((C, 1), lambda b: (0, 0)),           # bv
            pl.BlockSpec((9, C, C), lambda b: (0, 0, 0)),     # w1 (tap-major)
            pl.BlockSpec((C, 1), lambda b: (0, 0)),           # b1
            pl.BlockSpec((9, C, C), lambda b: (0, 0, 0)),     # w2 (tap-major)
            pl.BlockSpec((C, 1), lambda b: (0, 0)),           # b2
        ],
        out_specs=pl.BlockSpec((1, C, N), lambda b: (b, 0, 0)),
        compiler_params=pltpu.CompilerParams(
            dimension_semantics=("parallel",),
            vmem_limit_bytes=64 * 1024 * 1024,
        ),
    )(gamma, x, wq, bq, wk, bk, wv, bv, w1, b1, w2, b2)
    return out.reshape(B, C, H, W)


# ---------------------------------------------------------------------------
# Pure-JAX reference (for verification)
# ---------------------------------------------------------------------------
def res_block_reference(x_nchw, p):
    B, C, H, W = x_nchw.shape
    N = H * W
    x = x_nchw.reshape(B, C, N).astype(jnp.float32)

    q = jnp.einsum("oc,bcn->bon", p["wq"], x) + p["bq"][None, :, None]
    k = jnp.einsum("oc,bcn->bon", p["wk"], x) + p["bk"][None, :, None]
    v = jnp.einsum("oc,bcn->bon", p["wv"], x) + p["bv"][None, :, None]
    attn = jax.nn.softmax(jnp.einsum("bci,bcj->bij", q, k), axis=-1)
    o = jnp.einsum("bcj,bij->bci", v, attn)
    xa = p["gamma"][0] * o + x
    xa_img = xa.reshape(B, C, H, W)

    def conv_in(h, w_oihw, b, relu):
        y = lax.conv_general_dilated(h, w_oihw, (1, 1), "SAME",
                                     dimension_numbers=("NCHW", "OIHW", "NCHW"))
        y = y + b.reshape(1, -1, 1, 1)
        mean = jnp.mean(y, axis=(2, 3), keepdims=True)
        var = jnp.mean(jnp.square(y - mean), axis=(2, 3), keepdims=True)
        y = (y - mean) * lax.rsqrt(var + 1e-5)
        return jnp.maximum(y, 0.0) if relu else y

    out = conv_in(xa_img, p["w1"], p["b1"], True)
    out = conv_in(out, p["w2"], p["b2"], False)
    return out + xa_img


if __name__ == "__main__":
    B, dim, H, W = 2, 8, 16, 16        # dim must be >= 8 so dim // 8 >= 1 (as in the PyTorch module)
    dim8 = dim // 8

    key = jax.random.PRNGKey(0)
    ks = jax.random.split(key, 11)
    f32 = jnp.float32
    params = {
        "wq": 0.2 * jax.random.normal(ks[0], (dim8, dim), f32),       # 1x1 conv weight [out, in]
        "bq": 0.1 * jax.random.normal(ks[1], (dim8,), f32),
        "wk": 0.2 * jax.random.normal(ks[2], (dim8, dim), f32),
        "bk": 0.1 * jax.random.normal(ks[3], (dim8,), f32),
        "wv": 0.2 * jax.random.normal(ks[4], (dim, dim), f32),
        "bv": 0.1 * jax.random.normal(ks[5], (dim,), f32),
        # PyTorch inits gamma to 0; use a nonzero value so the attention path is exercised.
        "gamma": jnp.full((1,), 0.5, f32),
        "w1": 0.2 * jax.random.normal(ks[6], (dim, dim, 3, 3), f32),  # OIHW
        "b1": 0.1 * jax.random.normal(ks[7], (dim,), f32),
        "w2": 0.2 * jax.random.normal(ks[8], (dim, dim, 3, 3), f32),  # OIHW
        "b2": 0.1 * jax.random.normal(ks[9], (dim,), f32),
    }
    x = jax.random.normal(ks[10], (B, dim, H, W), f32)                # NCHW like PyTorch

    out = jax.block_until_ready(res_block_forward(x, params))
    ref = jax.block_until_ready(res_block_reference(x, params))

    assert out.shape == (B, dim, H, W)
    max_err = float(jnp.max(jnp.abs(out - ref)))
    assert max_err < 2e-2, f"mismatch vs reference: max abs err = {max_err}"
    print("KERNEL_OK")
</pallas_src>

<mosaic_0001>
module attributes {stable_mosaic.version = 11 : i64} {
  func.func @_resblock_kernel(%arg0: i32, %arg1: memref<1xf32, #tpu.memory_space<smem>>, %arg2: memref<1x8x256xf32, #tpu.memory_space<vmem>>, %arg3: memref<8x8xf32, #tpu.memory_space<vmem>>, %arg4: memref<8x1xf32, #tpu.memory_space<vmem>>, %arg5: memref<8x8xf32, #tpu.memory_space<vmem>>, %arg6: memref<8x1xf32, #tpu.memory_space<vmem>>, %arg7: memref<8x8xf32, #tpu.memory_space<vmem>>, %arg8: memref<8x1xf32, #tpu.memory_space<vmem>>, %arg9: memref<9x8x8xf32, #tpu.memory_space<vmem>>, %arg10: memref<8x1xf32, #tpu.memory_space<vmem>>, %arg11: memref<9x8x8xf32, #tpu.memory_space<vmem>>, %arg12: memref<8x1xf32, #tpu.memory_space<vmem>>, %arg13: memref<1x8x256xf32, #tpu.memory_space<vmem>>) attributes {dimension_semantics = [#tpu.dimension_semantics<parallel>], iteration_bounds = array<i64: 2>, scalar_prefetch = 0 : i64, scratch_operands = 0 : i64, tpu.core_type = #tpu.core_type<tc>, window_params = [{transform_indices = @transform_0, window_bounds = array<i64: 1>}, {transform_indices = @transform_1, window_bounds = array<i64: 1, 8, 256>}, {pipeline_mode = #tpu.pipeline_mode<synchronous>, transform_indices = @transform_2, window_bounds = array<i64: 8, 8>}, {pipeline_mode = #tpu.pipeline_mode<synchronous>, transform_indices = @transform_3, window_bounds = array<i64: 8, 1>}, {pipeline_mode = #tpu.pipeline_mode<synchronous>, transform_indices = @transform_4, window_bounds = array<i64: 8, 8>}, {pipeline_mode = #tpu.pipeline_mode<synchronous>, transform_indices = @transform_5, window_bounds = array<i64: 8, 1>}, {pipeline_mode = #tpu.pipeline_mode<synchronous>, transform_indices = @transform_6, window_bounds = array<i64: 8, 8>}, {pipeline_mode = #tpu.pipeline_mode<synchronous>, transform_indices = @transform_7, window_bounds = array<i64: 8, 1>}, {pipeline_mode = #tpu.pipeline_mode<synchronous>, transform_indices = @transform_8, window_bounds = array<i64: 9, 8, 8>}, {pipeline_mode = #tpu.pipeline_mode<synchronous>, transform_indices = @transform_9, window_bounds = array<i64: 8, 1>}, {pipeline_mode = #tpu.pipeline_mode<synchronous>, transform_indices = @transform_10, window_bounds = array<i64: 9, 8, 8>}, {pipeline_mode = #tpu.pipeline_mode<synchronous>, transform_indices = @transform_11, window_bounds = array<i64: 8, 1>}, {transform_indices = @transform_12, window_bounds = array<i64: 1, 8, 256>}]} {
    %c0 = arith.constant 0 : index
    %c0_0 = arith.constant 0 : index
    %c0_1 = arith.constant 0 : index
    %0 = vector.load %arg2[%c0, %c0_0, %c0_1] : memref<1x8x256xf32, #tpu.memory_space<vmem>>, vector<1x8x256xf32>
    %1 = vector.shape_cast %0 : vector<1x8x256xf32> to vector<8x256xf32>
    %c0_2 = arith.constant 0 : index
    %c0_3 = arith.constant 0 : index
    %2 = vector.load %arg3[%c0_2, %c0_3] : memref<8x8xf32, #tpu.memory_space<vmem>>, vector<8x8xf32>
    %cst = arith.constant dense<0.000000e+00> : vector<8x256xf32>
    %3 = tpu.matmul %2, %1, %cst {dimension_numbers = #tpu.dot_dimension_numbers<[1], [0], [0], [1], [0, 0, 1, 1], [], []>} : vector<8x8xf32>, vector<8x256xf32>, vector<8x256xf32> -> vector<8x256xf32>
    %c0_4 = arith.constant 0 : index
    %c0_5 = arith.constant 0 : index
    %4 = vector.load %arg4[%c0_4, %c0_5] : memref<8x1xf32, #tpu.memory_space<vmem>>, vector<8x1xf32>
    %5 = vector.broadcast %4 : vector<8x1xf32> to vector<8x256xf32>
    %6 = arith.addf %3, %5 : vector<8x256xf32>
    %c0_6 = arith.constant 0 : index
    %c0_7 = arith.constant 0 : index
    %7 = vector.load %arg5[%c0_6, %c0_7] : memref<8x8xf32, #tpu.memory_space<vmem>>, vector<8x8xf32>
    %cst_8 = arith.constant dense<0.000000e+00> : vector<8x256xf32>
    %8 = tpu.matmul %7, %1, %cst_8 {dimension_numbers = #tpu.dot_dimension_numbers<[1], [0], [0], [1], [0, 0, 1, 1], [], []>} : vector<8x8xf32>, vector<8x256xf32>, vector<8x256xf32> -> vector<8x256xf32>
    %c0_9 = arith.constant 0 : index
    %c0_10 = arith.constant 0 : index
    %9 = vector.load %arg6[%c0_9, %c0_10] : memref<8x1xf32, #tpu.memory_space<vmem>>, vector<8x1xf32>
    %10 = vector.broadcast %9 : vector<8x1xf32> to vector<8x256xf32>
    %11 = arith.addf %8, %10 : vector<8x256xf32>
    %c0_11 = arith.constant 0 : index
    %c0_12 = arith.constant 0 : index
    %12 = vector.load %arg7[%c0_11, %c0_12] : memref<8x8xf32, #tpu.memory_space<vmem>>, vector<8x8xf32>
    %cst_13 = arith.constant dense<0.000000e+00> : vector<8x256xf32>
    %13 = tpu.matmul %12, %1, %cst_13 {dimension_numbers = #tpu.dot_dimension_numbers<[1], [0], [0], [1], [0, 0, 1, 1], [], []>} : vector<8x8xf32>, vector<8x256xf32>, vector<8x256xf32> -> vector<8x256xf32>
    %c0_14 = arith.constant 0 : index
    %c0_15 = arith.constant 0 : index
    %14 = vector.load %arg8[%c0_14, %c0_15] : memref<8x1xf32, #tpu.memory_space<vmem>>, vector<8x1xf32>
    %15 = vector.broadcast %14 : vector<8x1xf32> to vector<8x256xf32>
    %16 = arith.addf %13, %15 : vector<8x256xf32>
    %17 = tpu.transpose %6, [1, 0] : vector<8x256xf32> -> vector<256x8xf32>
    %cst_16 = arith.constant dense<0.000000e+00> : vector<256x256xf32>
    %18 = tpu.matmul %17, %11, %cst_16 {dimension_numbers = #tpu.dot_dimension_numbers<[1], [0], [0], [1], [0, 0, 1, 1], [], []>} : vector<256x8xf32>, vector<8x256xf32>, vector<256x256xf32> -> vector<256x256xf32>
    %cst_17 = arith.constant dense<0xFF800000> : vector<256xf32>
    %19 = vector.multi_reduction <maximumf>, %18, %cst_17 [1] : vector<256x256xf32> to vector<256xf32>
    %20 = vector.shape_cast %19 : vector<256xf32> to vector<256x1xf32>
    %21 = vector.broadcast %20 : vector<256x1xf32> to vector<256x256xf32>
    %22 = arith.subf %18, %21 : vector<256x256xf32>
    %23 = math.exp %22 : vector<256x256xf32>
    %cst_18 = arith.constant dense<0.000000e+00> : vector<256xf32>
    %24 = vector.multi_reduction <add>, %23, %cst_18 [1] : vector<256x256xf32> to vector<256xf32>
    %25 = vector.shape_cast %24 : vector<256xf32> to vector<256x1xf32>
    %26 = tpu.reciprocal %25 {approx = true} : vector<256x1xf32> -> vector<256x1xf32>
    %27 = vector.broadcast %26 : vector<256x1xf32> to vector<256x256xf32>
    %28 = arith.mulf %23, %27 : vector<256x256xf32>
    %cst_19 = arith.constant dense<0.000000e+00> : vector<8x256xf32>
    %29 = tpu.matmul %16, %28, %cst_19 {dimension_numbers = #tpu.dot_dimension_numbers<[1], [1], [0], [0], [0, 0, 1, 0], [], []>} : vector<8x256xf32>, vector<256x256xf32>, vector<8x256xf32> -> vector<8x256xf32>
    %c0_20 = arith.constant 0 : index
    %30 = memref.load %arg1[%c0_20] : memref<1xf32, #tpu.memory_space<smem>>
    %31 = vector.broadcast %30 : f32 to vector<8x256xf32>
    %32 = arith.mulf %31, %29 : vector<8x256xf32>
    %33 = arith.addf %32, %1 : vector<8x256xf32>
    %34 = tpu.iota {dimensions = array<i32: 1>} : vector<1x256xi32>
    %c16_i32 = arith.constant 16 : i32
    %c0_i32 = arith.constant 0 : i32
    %35 = arith.cmpi eq, %c16_i32, %c0_i32 : i32
    %c1_i32 = arith.constant 1 : i32
    %36 = arith.select %35, %c1_i32, %c16_i32 : i32
    %37 = vector.broadcast %36 : i32 to vector<1x256xi32>
    %38 = arith.remsi %34, %37 : vector<1x256xi32>
    %c0_i32_21 = arith.constant 0 : i32
    %39 = vector.broadcast %c0_i32_21 : i32 to vector<1x256xi32>
    %40 = arith.cmpi ne, %38, %39 : vector<1x256xi32>
    %c0_i32_22 = arith.constant 0 : i32
    %41 = vector.broadcast %c0_i32_22 : i32 to vector<1x256xi32>
    %42 = arith.cmpi slt, %38, %41 : vector<1x256xi32>
    %c0_i32_23 = arith.constant 0 : i32
    %43 = arith.cmpi slt, %36, %c0_i32_23 : i32
    %44 = vector.broadcast %43 : i1 to vector<1x256xi1>
    %45 = vector.broadcast %44 : vector<1x256xi1> to vector<1x256xi1>
    %46 = arith.xori %42, %45 : vector<1x256xi1>
    %47 = arith.andi %46, %40 : vector<1x256xi1>
    %48 = vector.broadcast %36 : i32 to vector<1x256xi32>
    %49 = arith.addi %38, %48 : vector<1x256xi32>
    %50 = arith.select %47, %49, %38 : vector<1x256xi1>, vector<1x256xi32>
    %c0_i32_24 = arith.constant 0 : i32
    %51 = vector.broadcast %c0_i32_24 : i32 to vector<1x256xi32>
    %52 = arith.cmpi sgt, %50, %51 : vector<1x256xi32>
    %c15_i32 = arith.constant 15 : i32
    %53 = vector.broadcast %c15_i32 : i32 to vector<1x256xi32>
    %54 = arith.cmpi slt, %50, %53 : vector<1x256xi32>
    %cst_25 = arith.constant 0.000000e+00 : f32
    %55 = vector.broadcast %cst_25 : f32 to vector<8x17xf32>
    %56 = tpu.concatenate %55, %33, %55 in 1 : vector<8x17xf32>, vector<8x256xf32>, vector<8x17xf32> -> vector<8x290xf32>
    %cst_26 = arith.constant 0.000000e+00 : f32
    %57 = vector.broadcast %cst_26 : f32 to vector<8x256xf32>
    %58 = vector.extract_strided_slice %56 {offsets = [0, 0], sizes = [8, 256], strides = [1, 1]} : vector<8x290xf32> to vector<8x256xf32>
    %cst_27 = arith.constant 0.000000e+00 : f32
    %59 = vector.shape_cast %52 : vector<1x256xi1> to vector<1x256xi1>
    %60 = vector.broadcast %59 : vector<1x256xi1> to vector<8x256xi1>
    %61 = vector.broadcast %cst_27 : f32 to vector<8x256xf32>
    %62 = arith.select %60, %58, %61 : vector<8x256xi1>, vector<8x256xf32>
    %c0_28 = arith.constant 0 : index
    %c0_29 = arith.constant 0 : index
    %c0_30 = arith.constant 0 : index
    %63 = vector.load %arg9[%c0_28, %c0_29, %c0_30] : memref<9x8x8xf32, #tpu.memory_space<vmem>>, vector<1x8x8xf32>
    %64 = vector.shape_cast %63 : vector<1x8x8xf32> to vector<8x8xf32>
    %cst_31 = arith.constant dense<0.000000e+00> : vector<8x256xf32>
    %65 = tpu.matmul %64, %62, %cst_31 {dimension_numbers = #tpu.dot_dimension_numbers<[1], [0], [0], [1], [0, 0, 1, 1], [], []>} : vector<8x8xf32>, vector<8x256xf32>, vector<8x256xf32> -> vector<8x256xf32>
    %66 = arith.addf %57, %65 : vector<8x256xf32>
    %67 = vector.extract_strided_slice %56 {offsets = [0, 1], sizes = [8, 256], strides = [1, 1]} : vector<8x290xf32> to vector<8x256xf32>
    %c1 = arith.constant 1 : index
    %c0_32 = arith.constant 0 : index
    %c0_33 = arith.constant 0 : index
    %68 = vector.load %arg9[%c1, %c0_32, %c0_33] : memref<9x8x8xf32, #tpu.memory_space<vmem>>, vector<1x8x8xf32>
    %69 = vector.shape_cast %68 : vector<1x8x8xf32> to vector<8x8xf32>
    %cst_34 = arith.constant dense<0.000000e+00> : vector<8x256xf32>
    %70 = tpu.matmul %69, %67, %cst_34 {dimension_numbers = #tpu.dot_dimension_numbers<[1], [0], [0], [1], [0, 0, 1, 1], [], []>} : vector<8x8xf32>, vector<8x256xf32>, vector<8x256xf32> -> vector<8x256xf32>
    %71 = arith.addf %66, %70 : vector<8x256xf32>
    %72 = vector.extract_strided_slice %56 {offsets = [0, 2], sizes = [8, 256], strides = [1, 1]} : vector<8x290xf32> to vector<8x256xf32>
    %cst_35 = arith.constant 0.000000e+00 : f32
    %73 = vector.shape_cast %54 : vector<1x256xi1> to vector<1x256xi1>
    %74 = vector.broadcast %73 : vector<1x256xi1> to vector<8x256xi1>
    %75 = vector.broadcast %cst_35 : f32 to vector<8x256xf32>
    %76 = arith.select %74, %72, %75 : vector<8x256xi1>, vector<8x256xf32>
    %c2 = arith.constant 2 : index
    %c0_36 = arith.constant 0 : index
    %c0_37 = arith.constant 0 : index
    %77 = vector.load %arg9[%c2, %c0_36, %c0_37] : memref<9x8x8xf32, #tpu.memory_space<vmem>>, vector<1x8x8xf32>
    %78 = vector.shape_cast %77 : vector<1x8x8xf32> to vector<8x8xf32>
    %cst_38 = arith.constant dense<0.000000e+00> : vector<8x256xf32>
    %79 = tpu.matmul %78, %76, %cst_38 {dimension_numbers = #tpu.dot_dimension_numbers<[1], [0], [0], [1], [0, 0, 1, 1], [], []>} : vector<8x8xf32>, vector<8x256xf32>, vector<8x256xf32> -> vector<8x256xf32>
    %80 = arith.addf %71, %79 : vector<8x256xf32>
    %81 = vector.extract_strided_slice %56 {offsets = [0, 16], sizes = [8, 256], strides = [1, 1]} : vector<8x290xf32> to vector<8x256xf32>
    %cst_39 = arith.constant 0.000000e+00 : f32
    %82 = vector.shape_cast %52 : vector<1x256xi1> to vector<1x256xi1>
    %83 = vector.broadcast %82 : vector<1x256xi1> to vector<8x256xi1>
    %84 = vector.broadcast %cst_39 : f32 to vector<8x256xf32>
    %85 = arith.select %83, %81, %84 : vector<8x256xi1>, vector<8x256xf32>
    %c3 = arith.constant 3 : index
    %c0_40 = arith.constant 0 : index
    %c0_41 = arith.constant 0 : index
    %86 = vector.load %arg9[%c3, %c0_40, %c0_41] : memref<9x8x8xf32, #tpu.memory_space<vmem>>, vector<1x8x8xf32>
    %87 = vector.shape_cast %86 : vector<1x8x8xf32> to vector<8x8xf32>
    %cst_42 = arith.constant dense<0.000000e+00> : vector<8x256xf32>
    %88 = tpu.matmul %87, %85, %cst_42 {dimension_numbers = #tpu.dot_dimension_numbers<[1], [0], [0], [1], [0, 0, 1, 1], [], []>} : vector<8x8xf32>, vector<8x256xf32>, vector<8x256xf32> -> vector<8x256xf32>
    %89 = arith.addf %80, %88 : vector<8x256xf32>
    %90 = vector.extract_strided_slice %56 {offsets = [0, 17], sizes = [8, 256], strides = [1, 1]} : vector<8x290xf32> to vector<8x256xf32>
    %c4 = arith.constant 4 : index
    %c0_43 = arith.constant 0 : index
    %c0_44 = arith.constant 0 : index
    %91 = vector.load %arg9[%c4, %c0_43, %c0_44] : memref<9x8x8xf32, #tpu.memory_space<vmem>>, vector<1x8x8xf32>
    %92 = vector.shape_cast %91 : vector<1x8x8xf32> to vector<8x8xf32>
    %cst_45 = arith.constant dense<0.000000e+00> : vector<8x256xf32>
    %93 = tpu.matmul %92, %90, %cst_45 {dimension_numbers = #tpu.dot_dimension_numbers<[1], [0], [0], [1], [0, 0, 1, 1], [], []>} : vector<8x8xf32>, vector<8x256xf32>, vector<8x256xf32> -> vector<8x256xf32>
    %94 = arith.addf %89, %93 : vector<8x256xf32>
    %95 = vector.extract_strided_slice %56 {offsets = [0, 18], sizes = [8, 256], strides = [1, 1]} : vector<8x290xf32> to vector<8x256xf32>
    %cst_46 = arith.constant 0.000000e+00 : f32
    %96 = vector.shape_cast %54 : vector<1x256xi1> to vector<1x256xi1>
    %97 = vector.broadcast %96 : vector<1x256xi1> to vector<8x256xi1>
    %98 = vector.broadcast %cst_46 : f32 to vector<8x256xf32>
    %99 = arith.select %97, %95, %98 : vector<8x256xi1>, vector<8x256xf32>
    %c5 = arith.constant 5 : index
    %c0_47 = arith.constant 0 : index
    %c0_48 = arith.constant 0 : index
    %100 = vector.load %arg9[%c5, %c0_47, %c0_48] : memref<9x8x8xf32, #tpu.memory_space<vmem>>, vector<1x8x8xf32>
    %101 = vector.shape_cast %100 : vector<1x8x8xf32> to vector<8x8xf32>
    %cst_49 = arith.constant dense<0.000000e+00> : vector<8x256xf32>
    %102 = tpu.matmul %101, %99, %cst_49 {dimension_numbers = #tpu.dot_dimension_numbers<[1], [0], [0], [1], [0, 0, 1, 1], [], []>} : vector<8x8xf32>, vector<8x256xf32>, vector<8x256xf32> -> vector<8x256xf32>
    %103 = arith.addf %94, %102 : vector<8x256xf32>
    %104 = vector.extract_strided_slice %56 {offsets = [0, 32], sizes = [8, 256], strides = [1, 1]} : vector<8x290xf32> to vector<8x256xf32>
    %cst_50 = arith.constant 0.000000e+00 : f32
    %105 = vector.shape_cast %52 : vector<1x256xi1> to vector<1x256xi1>
    %106 = vector.broadcast %105 : vector<1x256xi1> to vector<8x256xi1>
    %107 = vector.broadcast %cst_50 : f32 to vector<8x256xf32>
    %108 = arith.select %106, %104, %107 : vector<8x256xi1>, vector<8x256xf32>
    %c6 = arith.constant 6 : index
    %c0_51 = arith.constant 0 : index
    %c0_52 = arith.constant 0 : index
    %109 = vector.load %arg9[%c6, %c0_51, %c0_52] : memref<9x8x8xf32, #tpu.memory_space<vmem>>, vector<1x8x8xf32>
    %110 = vector.shape_cast %109 : vector<1x8x8xf32> to vector<8x8xf32>
    %cst_53 = arith.constant dense<0.000000e+00> : vector<8x256xf32>
    %111 = tpu.matmul %110, %108, %cst_53 {dimension_numbers = #tpu.dot_dimension_numbers<[1], [0], [0], [1], [0, 0, 1, 1], [], []>} : vector<8x8xf32>, vector<8x256xf32>, vector<8x256xf32> -> vector<8x256xf32>
    %112 = arith.addf %103, %111 : vector<8x256xf32>
    %113 = vector.extract_strided_slice %56 {offsets = [0, 33], sizes = [8, 256], strides = [1, 1]} : vector<8x290xf32> to vector<8x256xf32>
    %c7 = arith.constant 7 : index
    %c0_54 = arith.constant 0 : index
    %c0_55 = arith.constant 0 : index
    %114 = vector.load %arg9[%c7, %c0_54, %c0_55] : memref<9x8x8xf32, #tpu.memory_space<vmem>>, vector<1x8x8xf32>
    %115 = vector.shape_cast %114 : vector<1x8x8xf32> to vector<8x8xf32>
    %cst_56 = arith.constant dense<0.000000e+00> : vector<8x256xf32>
    %116 = tpu.matmul %115, %113, %cst_56 {dimension_numbers = #tpu.dot_dimension_numbers<[1], [0], [0], [1], [0, 0, 1, 1], [], []>} : vector<8x8xf32>, vector<8x256xf32>, vector<8x256xf32> -> vector<8x256xf32>
    %117 = arith.addf %112, %116 : vector<8x256xf32>
    %118 = vector.extract_strided_slice %56 {offsets = [0, 34], sizes = [8, 256], strides = [1, 1]} : vector<8x290xf32> to vector<8x256xf32>
    %cst_57 = arith.constant 0.000000e+00 : f32
    %119 = vector.shape_cast %54 : vector<1x256xi1> to vector<1x256xi1>
    %120 = vector.broadcast %119 : vector<1x256xi1> to vector<8x256xi1>
    %121 = vector.broadcast %cst_57 : f32 to vector<8x256xf32>
    %122 = arith.select %120, %118, %121 : vector<8x256xi1>, vector<8x256xf32>
    %c8 = arith.constant 8 : index
    %c0_58 = arith.constant 0 : index
    %c0_59 = arith.constant 0 : index
    %123 = vector.load %arg9[%c8, %c0_58, %c0_59] : memref<9x8x8xf32, #tpu.memory_space<vmem>>, vector<1x8x8xf32>
    %124 = vector.shape_cast %123 : vector<1x8x8xf32> to vector<8x8xf32>
    %cst_60 = arith.constant dense<0.000000e+00> : vector<8x256xf32>
    %125 = tpu.matmul %124, %122, %cst_60 {dimension_numbers = #tpu.dot_dimension_numbers<[1], [0], [0], [1], [0, 0, 1, 1], [], []>} : vector<8x8xf32>, vector<8x256xf32>, vector<8x256xf32> -> vector<8x256xf32>
    %126 = arith.addf %117, %125 : vector<8x256xf32>
    %c0_61 = arith.constant 0 : index
    %c0_62 = arith.constant 0 : index
    %127 = vector.load %arg10[%c0_61, %c0_62] : memref<8x1xf32, #tpu.memory_space<vmem>>, vector<8x1xf32>
    %128 = vector.broadcast %127 : vector<8x1xf32> to vector<8x256xf32>
    %129 = arith.addf %126, %128 : vector<8x256xf32>
    %cst_63 = arith.constant dense<0.000000e+00> : vector<8xf32>
    %130 = vector.multi_reduction <add>, %129, %cst_63 [1] : vector<8x256xf32> to vector<8xf32>
    %131 = vector.shape_cast %130 : vector<8xf32> to vector<8x1xf32>
    %cst_64 = arith.constant 2.560000e+02 : f32
    %132 = vector.broadcast %cst_64 : f32 to vector<8x1xf32>
    %133 = arith.divf %131, %132 : vector<8x1xf32>
    %134 = vector.broadcast %133 : vector<8x1xf32> to vector<8x256xf32>
    %135 = arith.subf %129, %134 : vector<8x256xf32>
    %136 = arith.mulf %135, %135 : vector<8x256xf32>
    %cst_65 = arith.constant dense<0.000000e+00> : vector<8xf32>
    %137 = vector.multi_reduction <add>, %136, %cst_65 [1] : vector<8x256xf32> to vector<8xf32>
    %138 = vector.shape_cast %137 : vector<8xf32> to vector<8x1xf32>
    %cst_66 = arith.constant 2.560000e+02 : f32
    %139 = vector.broadcast %cst_66 : f32 to vector<8x1xf32>
    %140 = arith.divf %138, %139 : vector<8x1xf32>
    %141 = vector.broadcast %133 : vector<8x1xf32> to vector<8x256xf32>
    %142 = arith.subf %129, %141 : vector<8x256xf32>
    %cst_67 = arith.constant 9.99999974E-6 : f32
    %143 = vector.broadcast %cst_67 : f32 to vector<8x1xf32>
    %144 = arith.addf %140, %143 : vector<8x1xf32>
    %145 = math.rsqrt %144 : vector<8x1xf32>
    %146 = vector.broadcast %145 : vector<8x1xf32> to vector<8x256xf32>
    %147 = arith.mulf %142, %146 : vector<8x256xf32>
    %cst_68 = arith.constant 0.000000e+00 : f32
    %148 = vector.broadcast %cst_68 : f32 to vector<8x256xf32>
    %149 = arith.maximumf %147, %148 : vector<8x256xf32>
    %cst_69 = arith.constant 0.000000e+00 : f32
    %150 = vector.broadcast %cst_69 : f32 to vector<8x17xf32>
    %151 = tpu.concatenate %150, %149, %150 in 1 : vector<8x17xf32>, vector<8x256xf32>, vector<8x17xf32> -> vector<8x290xf32>
    %cst_70 = arith.constant 0.000000e+00 : f32
    %152 = vector.broadcast %cst_70 : f32 to vector<8x256xf32>
    %153 = vector.extract_strided_slice %151 {offsets = [0, 0], sizes = [8, 256], strides = [1, 1]} : vector<8x290xf32> to vector<8x256xf32>
    %cst_71 = arith.constant 0.000000e+00 : f32
    %154 = vector.shape_cast %52 : vector<1x256xi1> to vector<1x256xi1>
    %155 = vector.broadcast %154 : vector<1x256xi1> to vector<8x256xi1>
    %156 = vector.broadcast %cst_71 : f32 to vector<8x256xf32>
    %157 = arith.select %155, %153, %156 : vector<8x256xi1>, vector<8x256xf32>
    %c0_72 = arith.constant 0 : index
    %c0_73 = arith.constant 0 : index
    %c0_74 = arith.constant 0 : index
    %158 = vector.load %arg11[%c0_72, %c0_73, %c0_74] : memref<9x8x8xf32, #tpu.memory_space<vmem>>, vector<1x8x8xf32>
    %159 = vector.shape_cast %158 : vector<1x8x8xf32> to vector<8x8xf32>
    %cst_75 = arith.constant dense<0.000000e+00> : vector<8x256xf32>
    %160 = tpu.matmul %159, %157, %cst_75 {dimension_numbers = #tpu.dot_dimension_numbers<[1], [0], [0], [1], [0, 0, 1, 1], [], []>} : vector<8x8xf32>, vector<8x256xf32>, vector<8x256xf32> -> vector<8x256xf32>
    %161 = arith.addf %152, %160 : vector<8x256xf32>
    %162 = vector.extract_strided_slice %151 {offsets = [0, 1], sizes = [8, 256], strides = [1, 1]} : vector<8x290xf32> to vector<8x256xf32>
    %c1_76 = arith.constant 1 : index
    %c0_77 = arith.constant 0 : index
    %c0_78 = arith.constant 0 : index
    %163 = vector.load %arg11[%c1_76, %c0_77, %c0_78] : memref<9x8x8xf32, #tpu.memory_space<vmem>>, vector<1x8x8xf32>
    %164 = vector.shape_cast %163 : vector<1x8x8xf32> to vector<8x8xf32>
    %cst_79 = arith.constant dense<0.000000e+00> : vector<8x256xf32>
    %165 = tpu.matmul %164, %162, %cst_79 {dimension_numbers = #tpu.dot_dimension_numbers<[1], [0], [0], [1], [0, 0, 1, 1], [], []>} : vector<8x8xf32>, vector<8x256xf32>, vector<8x256xf32> -> vector<8x256xf32>
    %166 = arith.addf %161, %165 : vector<8x256xf32>
    %167 = vector.extract_strided_slice %151 {offsets = [0, 2], sizes = [8, 256], strides = [1, 1]} : vector<8x290xf32> to vector<8x256xf32>
    %cst_80 = arith.constant 0.000000e+00 : f32
    %168 = vector.shape_cast %54 : vector<1x256xi1> to vector<1x256xi1>
    %169 = vector.broadcast %168 : vector<1x256xi1> to vector<8x256xi1>
    %170 = vector.broadcast %cst_80 : f32 to vector<8x256xf32>
    %171 = arith.select %169, %167, %170 : vector<8x256xi1>, vector<8x256xf32>
    %c2_81 = arith.constant 2 : index
    %c0_82 = arith.constant 0 : index
    %c0_83 = arith.constant 0 : index
    %172 = vector.load %arg11[%c2_81, %c0_82, %c0_83] : memref<9x8x8xf32, #tpu.memory_space<vmem>>, vector<1x8x8xf32>
    %173 = vector.shape_cast %172 : vector<1x8x8xf32> to vector<8x8xf32>
    %cst_84 = arith.constant dense<0.000000e+00> : vector<8x256xf32>
    %174 = tpu.matmul %173, %171, %cst_84 {dimension_numbers = #tpu.dot_dimension_numbers<[1], [0], [0], [1], [0, 0, 1, 1], [], []>} : vector<8x8xf32>, vector<8x256xf32>, vector<8x256xf32> -> vector<8x256xf32>
    %175 = arith.addf %166, %174 : vector<8x256xf32>
    %176 = vector.extract_strided_slice %151 {offsets = [0, 16], sizes = [8, 256], strides = [1, 1]} : vector<8x290xf32> to vector<8x256xf32>
    %cst_85 = arith.constant 0.000000e+00 : f32
    %177 = vector.shape_cast %52 : vector<1x256xi1> to vector<1x256xi1>
    %178 = vector.broadcast %177 : vector<1x256xi1> to vector<8x256xi1>
    %179 = vector.broadcast %cst_85 : f32 to vector<8x256xf32>
    %180 = arith.select %178, %176, %179 : vector<8x256xi1>, vector<8x256xf32>
    %c3_86 = arith.constant 3 : index
    %c0_87 = arith.constant 0 : index
    %c0_88 = arith.constant 0 : index
    %181 = vector.load %arg11[%c3_86, %c0_87, %c0_88] : memref<9x8x8xf32, #tpu.memory_space<vmem>>, vector<1x8x8xf32>
    %182 = vector.shape_cast %181 : vector<1x8x8xf32> to vector<8x8xf32>
    %cst_89 = arith.constant dense<0.000000e+00> : vector<8x256xf32>
    %183 = tpu.matmul %182, %180, %cst_89 {dimension_numbers = #tpu.dot_dimension_numbers<[1], [0], [0], [1], [0, 0, 1, 1], [], []>} : vector<8x8xf32>, vector<8x256xf32>, vector<8x256xf32> -> vector<8x256xf32>
    %184 = arith.addf %175, %183 : vector<8x256xf32>
    %185 = vector.extract_strided_slice %151 {offsets = [0, 17], sizes = [8, 256], strides = [1, 1]} : vector<8x290xf32> to vector<8x256xf32>
    %c4_90 = arith.constant 4 : index
    %c0_91 = arith.constant 0 : index
    %c0_92 = arith.constant 0 : index
    %186 = vector.load %arg11[%c4_90, %c0_91, %c0_92] : memref<9x8x8xf32, #tpu.memory_space<vmem>>, vector<1x8x8xf32>
    %187 = vector.shape_cast %186 : vector<1x8x8xf32> to vector<8x8xf32>
    %cst_93 = arith.constant dense<0.000000e+00> : vector<8x256xf32>
    %188 = tpu.matmul %187, %185, %cst_93 {dimension_numbers = #tpu.dot_dimension_numbers<[1], [0], [0], [1], [0, 0, 1, 1], [], []>} : vector<8x8xf32>, vector<8x256xf32>, vector<8x256xf32> -> vector<8x256xf32>
    %189 = arith.addf %184, %188 : vector<8x256xf32>
    %190 = vector.extract_strided_slice %151 {offsets = [0, 18], sizes = [8, 256], strides = [1, 1]} : vector<8x290xf32> to vector<8x256xf32>
    %cst_94 = arith.constant 0.000000e+00 : f32
    %191 = vector.shape_cast %54 : vector<1x256xi1> to vector<1x256xi1>
    %192 = vector.broadcast %191 : vector<1x256xi1> to vector<8x256xi1>
    %193 = vector.broadcast %cst_94 : f32 to vector<8x256xf32>
    %194 = arith.select %192, %190, %193 : vector<8x256xi1>, vector<8x256xf32>
    %c5_95 = arith.constant 5 : index
    %c0_96 = arith.constant 0 : index
    %c0_97 = arith.constant 0 : index
    %195 = vector.load %arg11[%c5_95, %c0_96, %c0_97] : memref<9x8x8xf32, #tpu.memory_space<vmem>>, vector<1x8x8xf32>
    %196 = vector.shape_cast %195 : vector<1x8x8xf32> to vector<8x8xf32>
    %cst_98 = arith.constant dense<0.000000e+00> : vector<8x256xf32>
    %197 = tpu.matmul %196, %194, %cst_98 {dimension_numbers = #tpu.dot_dimension_numbers<[1], [0], [0], [1], [0, 0, 1, 1], [], []>} : vector<8x8xf32>, vector<8x256xf32>, vector<8x256xf32> -> vector<8x256xf32>
    %198 = arith.addf %189, %197 : vector<8x256xf32>
    %199 = vector.extract_strided_slice %151 {offsets = [0, 32], sizes = [8, 256], strides = [1, 1]} : vector<8x290xf32> to vector<8x256xf32>
    %cst_99 = arith.constant 0.000000e+00 : f32
    %200 = vector.shape_cast %52 : vector<1x256xi1> to vector<1x256xi1>
    %201 = vector.broadcast %200 : vector<1x256xi1> to vector<8x256xi1>
    %202 = vector.broadcast %cst_99 : f32 to vector<8x256xf32>
    %203 = arith.select %201, %199, %202 : vector<8x256xi1>, vector<8x256xf32>
    %c6_100 = arith.constant 6 : index
    %c0_101 = arith.constant 0 : index
    %c0_102 = arith.constant 0 : index
    %204 = vector.load %arg11[%c6_100, %c0_101, %c0_102] : memref<9x8x8xf32, #tpu.memory_space<vmem>>, vector<1x8x8xf32>
    %205 = vector.shape_cast %204 : vector<1x8x8xf32> to vector<8x8xf32>
    %cst_103 = arith.constant dense<0.000000e+00> : vector<8x256xf32>
    %206 = tpu.matmul %205, %203, %cst_103 {dimension_numbers = #tpu.dot_dimension_numbers<[1], [0], [0], [1], [0, 0, 1, 1], [], []>} : vector<8x8xf32>, vector<8x256xf32>, vector<8x256xf32> -> vector<8x256xf32>
    %207 = arith.addf %198, %206 : vector<8x256xf32>
    %208 = vector.extract_strided_slice %151 {offsets = [0, 33], sizes = [8, 256], strides = [1, 1]} : vector<8x290xf32> to vector<8x256xf32>
    %c7_104 = arith.constant 7 : index
    %c0_105 = arith.constant 0 : index
    %c0_106 = arith.constant 0 : index
    %209 = vector.load %arg11[%c7_104, %c0_105, %c0_106] : memref<9x8x8xf32, #tpu.memory_space<vmem>>, vector<1x8x8xf32>
    %210 = vector.shape_cast %209 : vector<1x8x8xf32> to vector<8x8xf32>
    %cst_107 = arith.constant dense<0.000000e+00> : vector<8x256xf32>
    %211 = tpu.matmul %210, %208, %cst_107 {dimension_numbers = #tpu.dot_dimension_numbers<[1], [0], [0], [1], [0, 0, 1, 1], [], []>} : vector<8x8xf32>, vector<8x256xf32>, vector<8x256xf32> -> vector<8x256xf32>
    %212 = arith.addf %207, %211 : vector<8x256xf32>
    %213 = vector.extract_strided_slice %151 {offsets = [0, 34], sizes = [8, 256], strides = [1, 1]} : vector<8x290xf32> to vector<8x256xf32>
    %cst_108 = arith.constant 0.000000e+00 : f32
    %214 = vector.shape_cast %54 : vector<1x256xi1> to vector<1x256xi1>
    %215 = vector.broadcast %214 : vector<1x256xi1> to vector<8x256xi1>
    %216 = vector.broadcast %cst_108 : f32 to vector<8x256xf32>
    %217 = arith.select %215, %213, %216 : vector<8x256xi1>, vector<8x256xf32>
    %c8_109 = arith.constant 8 : index
    %c0_110 = arith.constant 0 : index
    %c0_111 = arith.constant 0 : index
    %218 = vector.load %arg11[%c8_109, %c0_110, %c0_111] : memref<9x8x8xf32, #tpu.memory_space<vmem>>, vector<1x8x8xf32>
    %219 = vector.shape_cast %218 : vector<1x8x8xf32> to vector<8x8xf32>
    %cst_112 = arith.constant dense<0.000000e+00> : vector<8x256xf32>
    %220 = tpu.matmul %219, %217, %cst_112 {dimension_numbers = #tpu.dot_dimension_numbers<[1], [0], [0], [1], [0, 0, 1, 1], [], []>} : vector<8x8xf32>, vector<8x256xf32>, vector<8x256xf32> -> vector<8x256xf32>
    %221 = arith.addf %212, %220 : vector<8x256xf32>
    %c0_113 = arith.constant 0 : index
    %c0_114 = arith.constant 0 : index
    %222 = vector.load %arg12[%c0_113, %c0_114] : memref<8x1xf32, #tpu.memory_space<vmem>>, vector<8x1xf32>
    %223 = vector.broadcast %222 : vector<8x1xf32> to vector<8x256xf32>
    %224 = arith.addf %221, %223 : vector<8x256xf32>
    %cst_115 = arith.constant dense<0.000000e+00> : vector<8xf32>
    %225 = vector.multi_reduction <add>, %224, %cst_115 [1] : vector<8x256xf32> to vector<8xf32>
    %226 = vector.shape_cast %225 : vector<8xf32> to vector<8x1xf32>
    %cst_116 = arith.constant 2.560000e+02 : f32
    %227 = vector.broadcast %cst_116 : f32 to vector<8x1xf32>
    %228 = arith.divf %226, %227 : vector<8x1xf32>
    %229 = vector.broadcast %228 : vector<8x1xf32> to vector<8x256xf32>
    %230 = arith.subf %224, %229 : vector<8x256xf32>
    %231 = arith.mulf %230, %230 : vector<8x256xf32>
    %cst_117 = arith.constant dense<0.000000e+00> : vector<8xf32>
    %232 = vector.multi_reduction <add>, %231, %cst_117 [1] : vector<8x256xf32> to vector<8xf32>
    %233 = vector.shape_cast %232 : vector<8xf32> to vector<8x1xf32>
    %cst_118 = arith.constant 2.560000e+02 : f32
    %234 = vector.broadcast %cst_118 : f32 to vector<8x1xf32>
    %235 = arith.divf %233, %234 : vector<8x1xf32>
    %236 = vector.broadcast %228 : vector<8x1xf32> to vector<8x256xf32>
    %237 = arith.subf %224, %236 : vector<8x256xf32>
    %cst_119 = arith.constant 9.99999974E-6 : f32
    %238 = vector.broadcast %cst_119 : f32 to vector<8x1xf32>
    %239 = arith.addf %235, %238 : vector<8x1xf32>
    %240 = math.rsqrt %239 : vector<8x1xf32>
    %241 = vector.broadcast %240 : vector<8x1xf32> to vector<8x256xf32>
    %242 = arith.mulf %237, %241 : vector<8x256xf32>
    %243 = arith.addf %242, %33 : vector<8x256xf32>
    %c0_120 = arith.constant 0 : index
    %c0_121 = arith.constant 0 : index
    %c0_122 = arith.constant 0 : index
    %244 = vector.load %arg13[%c0_120, %c0_121, %c0_122] : memref<1x8x256xf32, #tpu.memory_space<vmem>>, vector<1x8x256xf32>
    %245 = vector.shape_cast %244 : vector<1x8x256xf32> to vector<8x256xf32>
    %246 = vector.shape_cast %243 : vector<8x256xf32> to vector<1x8x256xf32>
    tpu.vector_store %arg13[%c0_120, %c0_121, %c0_122], %246 {strides = array<i32>} : memref<1x8x256xf32, #tpu.memory_space<vmem>>, vector<1x8x256xf32>,
    return
  }
  func.func @transform_0(%arg0: i32) -> i32 {
    %c0_i32 = arith.constant 0 : i32
    %c0_i32_0 = arith.constant 0 : i32
    return %c0_i32 : i32
  }
  func.func @transform_1(%arg0: i32) -> (i32, i32, i32) {
    %c0_i32 = arith.constant 0 : i32
    %c0_i32_0 = arith.constant 0 : i32
    %c0_i32_1 = arith.constant 0 : i32
    return %arg0, %c0_i32, %c0_i32_0 : i32, i32, i32
  }
  func.func @transform_2(%arg0: i32) -> (i32, i32) {
    %c0_i32 = arith.constant 0 : i32
    %c0_i32_0 = arith.constant 0 : i32
    %c0_i32_1 = arith.constant 0 : i32
    return %c0_i32, %c0_i32_0 : i32, i32
  }
  func.func @transform_3(%arg0: i32) -> (i32, i32) {
    %c0_i32 = arith.constant 0 : i32
    %c0_i32_0 = arith.constant 0 : i32
    %c0_i32_1 = arith.constant 0 : i32
    return %c0_i32, %c0_i32_0 : i32, i32
  }
  func.func @transform_4(%arg0: i32) -> (i32, i32) {
    %c0_i32 = arith.constant 0 : i32
    %c0_i32_0 = arith.constant 0 : i32
    %c0_i32_1 = arith.constant 0 : i32
    return %c0_i32, %c0_i32_0 : i32, i32
  }
  func.func @transform_5(%arg0: i32) -> (i32, i32) {
    %c0_i32 = arith.constant 0 : i32
    %c0_i32_0 = arith.constant 0 : i32
    %c0_i32_1 = arith.constant 0 : i32
    return %c0_i32, %c0_i32_0 : i32, i32
  }
  func.func @transform_6(%arg0: i32) -> (i32, i32) {
    %c0_i32 = arith.constant 0 : i32
    %c0_i32_0 = arith.constant 0 : i32
    %c0_i32_1 = arith.constant 0 : i32
    return %c0_i32, %c0_i32_0 : i32, i32
  }
  func.func @transform_7(%arg0: i32) -> (i32, i32) {
    %c0_i32 = arith.constant 0 : i32
    %c0_i32_0 = arith.constant 0 : i32
    %c0_i32_1 = arith.constant 0 : i32
    return %c0_i32, %c0_i32_0 : i32, i32
  }
  func.func @transform_8(%arg0: i32) -> (i32, i32, i32) {
    %c0_i32 = arith.constant 0 : i32
    %c0_i32_0 = arith.constant 0 : i32
    %c0_i32_1 = arith.constant 0 : i32
    %c0_i32_2 = arith.constant 0 : i32
    return %c0_i32, %c0_i32_0, %c0_i32_1 : i32, i32, i32
  }
  func.func @transform_9(%arg0: i32) -> (i32, i32) {
    %c0_i32 = arith.constant 0 : i32
    %c0_i32_0 = arith.constant 0 : i32
    %c0_i32_1 = arith.constant 0 : i32
    return %c0_i32, %c0_i32_0 : i32, i32
  }
  func.func @transform_10(%arg0: i32) -> (i32, i32, i32) {
    %c0_i32 = arith.constant 0 : i32
    %c0_i32_0 = arith.constant 0 : i32
    %c0_i32_1 = arith.constant 0 : i32
    %c0_i32_2 = arith.constant 0 : i32
    return %c0_i32, %c0_i32_0, %c0_i32_1 : i32, i32, i32
  }
  func.func @transform_11(%arg0: i32) -> (i32, i32) {
    %c0_i32 = arith.constant 0 : i32
    %c0_i32_0 = arith.constant 0 : i32
    %c0_i32_1 = arith.constant 0 : i32
    return %c0_i32, %c0_i32_0 : i32, i32
  }
  func.func @transform_12(%arg0: i32) -> (i32, i32, i32) {
    %c0_i32 = arith.constant 0 : i32
    %c0_i32_0 = arith.constant 0 : i32
    %c0_i32_1 = arith.constant 0 : i32
    return %arg0, %c0_i32, %c0_i32_0 : i32, i32, i32
  }
}

</mosaic_0001>

<bundles_post_ra>
// kernel: tpu_custom_call.1
= control target key start
LH: loop header
LB: loop body
LE: loop exit
PB: predicated region body
PF: predicated region fallthrough
CT: control target
= control target key end

     0   :  { %s4894_s0 = inlined_call_operand.<no memory space> [shape: f32[1], index: 0, kind: input, shape index: {}]   ;;  %s4895_s1 = inlined_call_operand.vmem [shape: f32[2,8,256], index: 1, kind: input, shape index: {}]   ;;  %s4896_s2 = inlined_call_operand.vmem [shape: f32[8,8], index: 2, kind: input, shape index: {}]   ;;  %s4897_s3 = inlined_call_operand.vmem [shape: f32[8,1], index: 3, kind: input, shape index: {}]   ;;  %s4898_s4 = inlined_call_operand.vmem [shape: f32[8,8], index: 4, kind: input, shape index: {}]   ;;  %s4899_s5 = inlined_call_operand.vmem [shape: f32[8,1], index: 5, kind: input, shape index: {}]   ;;  %s4900_s6 = inlined_call_operand.vmem [shape: f32[8,8], index: 6, kind: input, shape index: {}]   ;;  %s4901_s7 = inlined_call_operand.vmem [shape: f32[8,1], index: 7, kind: input, shape index: {}]   ;;  %s4902_s8 = inlined_call_operand.vmem [shape: f32[9,8,8], index: 8, kind: input, shape index: {}]   ;;  %s4903_s9 = inlined_call_operand.vmem [shape: f32[8,1], index: 9, kind: input, shape index: {}]   ;;  %s4904_s10 = inlined_call_operand.vmem [shape: f32[9,8,8], index: 10, kind: input, shape index: {}]   ;;  %s4905_s11 = inlined_call_operand.vmem [shape: f32[8,1], index: 11, kind: input, shape index: {}]   ;;  %s4906_s12 = inlined_call_operand.hbm [shape: f32[2,8,256], index: 12, kind: output, shape index: {}]  }
   0x1   :  { %4943 = sst [smem:[#allocation27_spill]] %s4895_s1 }
   0x2   :  { %17 = sst [smem:[#allocation2]] %s4894_s0 }
   0x3   :  { %18 = vsyncpa [#allocation4], 0 }
   0x4   :  { %20 = vsyncpa [#allocation4 + $0x1], 0  ;;  %s3915_s23 = smov 0   ;;  %s3917_s24 = smov 0  }
   0x5   :  { %s3919_s25 = smov 0   ;;  %s3921_s26 = smov 0  }
   0x6 LB: > { %s3936_s0 = sadd.s32 4294967295, %s3833_s26   ;;  %s3416_s27 = sadd.s32 4294967294, %s3833_s26   ;;  %s3833_s26 = sphi %s3921_s26, %s5018_s26   ;;  %s3829_s25 = sphi %s3919_s25, %s5017_s25   ;;  %s3825_s24 = sphi %s3917_s24, %s5016_s24   ;;  %s3821_s23 = sphi %s3915_s23, %s5015_s23  }
   0x7   : > { %s3940_s28 = sadd.s32 1, %s3833_s26   ;;  %s290_s29 = sadd.s32 1, %s3829_s25 }
   0x8   : > { %s287_s30 = ssub.s32 %s3833_s26, %s3940_s28  ;;  %p300_p0 = scmp.ne.s32.totalorder %s3829_s25, %s3825_s24 }
   0x9   : > { %p288_p1 = scmp.eq.s32.totalorder %s287_s30, 0  ;;  %p301_p2 = scmp.eq.s32.totalorder %s3936_s0, 1 }
   0xa   : > { %p306_p3 = scmp.ne.s32.totalorder %s3825_s24, %s3821_s23  ;;  %p307_p4 = scmp.eq.s32.totalorder %s3416_s27, 1 }
   0xb   : > { %s3951_s13 = scalar_select %p288_p1, %s3829_s25, %s290_s29  }
   0xc   : > { %p3953_p5 = por %p301_p2, %p300_p0  ;;  %p3957_p6 = por %p307_p4, %p306_p3 }
   0xd   : > { %p3419_p7 = scmp.ge.s32.totalorder %s3833_s26, 1  ;;  %p366_p8 = scmp.lt.s32.totalorder %s3833_s26, 3 }
   0xf   : > { %p367_p9 = pnand %p3419_p7, %p366_p8 }
  0x11   : > { %370 = sbr.rel (%p367_p9) target bundleno = 2897 (0xb51), region = 68 }
  0x16   : > { %p408_p10 = scmp.lt.s32.totalorder %s3936_s0, 1  ;;  %v4907_v0 = vmov 0.0   ;;  %v416_v1 = vld [vmem:[%s4897_s3] sm:$0xff]  ;;  %v3836_v2 = vmov 0   ;;  %s4946_s1 = sld [smem:[#allocation27_spill]]  ;;  %vm422_vm0 = vcmask 64512  }
  0x17   : > { %490 = vmatprep.mubr.f32.mxu0 %v4907_v0  ;;  %571 = vmatprep.mubr.f32.mxu1 %v4907_v0  ;;  %v415_v3 = vld [vmem:[%s4896_s2] sm:$0xff]  ;;  %s1627_s29 = sld [smem:[#allocation2]]  ;;  %s3837_s30 = smov 17   ;;  %vm1670_vm1 = vcmask 138240   ;;  %vm1694_vm4 = vcmask 1039360   ;;  %vm1857_vm5 = vcmask 1031168  }
  0x18   : > { %s409_s18 = scalar_select %p408_p10, %s3936_s0, 1  ;;  %3573 = vset.pattern.permute.xlu0 %v3836_v2  ;;  %v497_v6 = vld [vmem:[%s4898_s4] sm:$0xff]  ;;  %vm1948_vm8 = vcmask 916480   ;;  %vm2041_vm9 = vcmask 908288   ;;  %vm2128_vm10 = vcmask 900096   ;;  %vm2219_vm11 = vcmask 785408  }
  0x19   : > { %419 = vperm.xlu0 %3573, %v416_v1   ;;  %v498_v7 = vld [vmem:[%s4899_s5] sm:$0xff]  ;;  %s3839_s16 = smov 127   ;;  %s3840_s17 = smov 111   ;;  %vm2312_vm12 = vcmask 777216   ;;  %vm2399_vm13 = vcmask 769024  }
  0x1a   : > { %s3521_s19 = sshll.u32 %s409_s18, 4  ;;  %s4937_s18 = smov 112  }
  0x1b   : > { %s3843_s20 = smov 110   ;;  %s4941_s21 = smov 95  }
  0x1c   : > { %s3973_s22 = scalar_lea.vmem %s4946_s1, %s3521_s19  ;;  %s3842_s19 = smov 96  }
  0x1d   : > { %v414_v4 = vld [vmem:[%s3973_s22 + $0x8] sm:$0xff]  ;;  %v413_v5 = vld [vmem:[%s3973_s22] sm:$0xff]  ;;  %501 = vperm.xlu0 %3573, %v498_v7   ;;  %s4939_s27 = smov 94  }
  0x1e   : > { %456 = vmatprep.subr.mxu0 %v414_v4  ;;  %537 = vmatprep.subr.mxu1 %v414_v4 }
  0x1f   : > { %457 = vmatpush1.msra.mxu0 %v413_v5  ;;  %538 = vmatpush1.msra.mxu1 %v413_v5 }
  0x20   : > { %3423 = vmatmul.mubr.msk.f32.vlgmr.msra.gmra.mxu0 %vm422_vm0, %v415_v3  ;;  %3424 = vmatmul.mubr.msk.f32.vlgmr.msra.gmra.mxu1 %vm422_vm0, %v497_v6 }
  0x21   : > { %883 = vmatprep.mubr.f32.mxu1 %v4907_v0  ;;  %618 = vmatprep.subr.mxu0 %v414_v4 }
  0x22   : > { %652 = vmatprep.mubr.f32.mxu0 %v4907_v0  ;;  %619 = vmatpush1.msra.mxu0 %v413_v5 }
  0x94   : > { %v420_v8 = vpop.permute.xlu0 %419 }
  0x98   : > { %v502_v11 = vpop.permute.xlu0 %501 }
  0xe0   : > { %v492_v9 = vpop.f32.mrf.mxu0  ;;  %v573_v10 = vpop.f32.mrf.mxu1 }
  0xe1   : > { %v493_v12 = vadd.f32 %v492_v9, %v420_v8  ;;  %v574_v15 = vadd.f32 %v573_v10, %v502_v11 }
  0xe2   : > { %v575_v13 = vpop.f32.mrf.mxu1  ;;  %v494_v16 = vpop.f32.mrf.mxu0 }
  0xe3   : > { %v576_v14 = vadd.f32 %v575_v13, %v502_v11  ;;  %659 = vxpose.xlu1.b32.start.end [1/1] (short) %v493_v12, 128  ;;  %v495_v17 = vadd.f32 %v494_v16, %v420_v8 }
  0xe5   : > { %849 = vmatprep.subr.mxu1 %v576_v14 }
  0xe6   : > { %850 = vmatpush1.msra.mxu1 %v574_v15 }
 0x120   : > { %691 = vxpose.xlu1.b32.start.end [1/1] (short) %v495_v17, 128 }
 0x13e   : > { %3574 = vset.pattern.permute.xlu1 %v3836_v2 }
 0x15f   : > { %v675_v18 = vpop.trf.xlu1 }
 0x160   : > { %3426 = vmatmul.mubr.msk.f32.vlgmr.msra.gmra.mxu1 %vm422_vm0, %v675_v18 }
 0x161   : > { %889 = vmatprep.mubr.f32.mxu1 %v4907_v0 }
 0x163   : > { %v676_v19 = vpop.trf.xlu1 }
 0x164   : > { %3427 = vmatmul.mubr.msk.f32.gmra.mxu1 %vm422_vm0, %v676_v19 }
 0x165   : > { %895 = vmatprep.mubr.f32.mxu1 %v4907_v0 }
 0x167   : > { %v677_v20 = vpop.trf.xlu1 }
 0x168   : > { %3428 = vmatmul.mubr.msk.f32.gmra.mxu1 %vm422_vm0, %v677_v20 }
 0x169   : > { %901 = vmatprep.mubr.f32.mxu1 %v4907_v0 }
 0x16b   : > { %v678_v21 = vpop.trf.xlu1 }
 0x16c   : > { %3429 = vmatmul.mubr.msk.f32.gmra.mxu1 %vm422_vm0, %v678_v21 }
 0x16d   : > { %907 = vmatprep.mubr.f32.mxu1 %v4907_v0 }
 0x16f   : > { %v679_v22 = vpop.trf.xlu1 }
 0x170   : > { %3430 = vmatmul.mubr.msk.f32.gmra.mxu1 %vm422_vm0, %v679_v22 }
 0x171   : > { %913 = vmatprep.mubr.f32.mxu1 %v4907_v0 }
 0x173   : > { %v680_v23 = vpop.trf.xlu1 }
 0x174   : > { %3431 = vmatmul.mubr.msk.f32.gmra.mxu1 %vm422_vm0, %v680_v23 }
 0x175   : > { %919 = vmatprep.mubr.f32.mxu1 %v4907_v0 }
 0x177   : > { %v681_v24 = vpop.trf.xlu1 }
 0x178   : > { %3432 = vmatmul.mubr.msk.f32.gmra.mxu1 %vm422_vm0, %v681_v24 }
 0x179   : > { %925 = vmatprep.mubr.f32.mxu1 %v4907_v0 }
 0x17b   : > { %v682_v25 = vpop.trf.xlu1 }
 0x17c   : > { %3433 = vmatmul.mubr.msk.f32.gmra.mxu1 %vm422_vm0, %v682_v25 }
 0x17d   : > { %931 = vmatprep.mubr.f32.mxu1 %v4907_v0 }
 0x17f   : > { %v683_v26 = vpop.trf.xlu1 }
 0x180   : > { %3434 = vmatmul.mubr.msk.f32.gmra.mxu1 %vm422_vm0, %v683_v26 }
 0x181   : > { %937 = vmatprep.mubr.f32.mxu1 %v4907_v0 }
 0x183   : > { %v684_v27 = vpop.trf.xlu1 }
 0x184   : > { %3435 = vmatmul.mubr.msk.f32.gmra.mxu1 %vm422_vm0, %v684_v27 }
 0x185   : > { %943 = vmatprep.mubr.f32.mxu1 %v4907_v0 }
 0x187   : > { %v685_v28 = vpop.trf.xlu1 }
 0x188   : > { %3436 = vmatmul.mubr.msk.f32.gmra.mxu1 %vm422_vm0, %v685_v28 }
 0x189   : > { %949 = vmatprep.mubr.f32.mxu1 %v4907_v0 }
 0x18b   : > { %v686_v29 = vpop.trf.xlu1 }
 0x18c   : > { %3437 = vmatmul.mubr.msk.f32.gmra.mxu1 %vm422_vm0, %v686_v29 }
 0x18d   : > { %955 = vmatprep.mubr.f32.mxu1 %v4907_v0 }
 0x18f   : > { %v687_v30 = vpop.trf.xlu1 }
 0x190   : > { %3438 = vmatmul.mubr.msk.f32.gmra.mxu1 %vm422_vm0, %v687_v30 }
 0x191   : > { %961 = vmatprep.mubr.f32.mxu1 %v4907_v0 }
 0x193   : > { %v688_v31 = vpop.trf.xlu1 }
 0x194   : > { %3439 = vmatmul.mubr.msk.f32.gmra.mxu1 %vm422_vm0, %v688_v31 }
 0x195   : > { %967 = vmatprep.mubr.f32.mxu1 %v4907_v0 }
 0x197   : > { %v689_v32 = vpop.trf.xlu1 }
 0x198   : > { %3440 = vmatmul.mubr.msk.f32.gmra.mxu1 %vm422_vm0, %v689_v32 }
 0x199   : > { %973 = vmatprep.mubr.f32.mxu1 %v4907_v0 }
 0x19b   : > { %v690_v33 = vpop.trf.xlu1 }
 0x19c   : > { %3441 = vmatmul.mubr.msk.f32.gmra.mxu1 %vm422_vm0, %v690_v33 }
 0x19d   : > { %979 = vmatprep.mubr.f32.mxu1 %v4907_v0 }
 0x19f   : > { %v707_v34 = vpop.trf.xlu1 }
 0x1a0   : > { %3442 = vmatmul.mubr.msk.f32.gmra.mxu1 %vm422_vm0, %v707_v34 }
 0x1a1   : > { %985 = vmatprep.mubr.f32.mxu1 %v4907_v0 }
 0x1a3   : > { %v708_v35 = vpop.trf.xlu1 }
 0x1a4   : > { %3443 = vmatmul.mubr.msk.f32.gmra.mxu1 %vm422_vm0, %v708_v35 }
 0x1a5   : > { %991 = vmatprep.mubr.f32.mxu1 %v4907_v0 }
 0x1a7   : > { %v709_v36 = vpop.trf.xlu1 }
 0x1a8   : > { %3444 = vmatmul.mubr.msk.f32.gmra.mxu1 %vm422_vm0, %v709_v36 }
 0x1a9   : > { %997 = vmatprep.mubr.f32.mxu1 %v4907_v0 }
 0x1ab   : > { %v710_v37 = vpop.trf.xlu1 }
 0x1ac   : > { %3445 = vmatmul.mubr.msk.f32.gmra.mxu1 %vm422_vm0, %v710_v37 }
 0x1ad   : > { %1003 = vmatprep.mubr.f32.mxu1 %v4907_v0 }
 0x1af   : > { %v711_v38 = vpop.trf.xlu1 }
 0x1b0   : > { %3446 = vmatmul.mubr.msk.f32.gmra.mxu1 %vm422_vm0, %v711_v38 }
 0x1b1   : > { %1009 = vmatprep.mubr.f32.mxu1 %v4907_v0 }
 0x1b3   : > { %v712_v39 = vpop.trf.xlu1 }
 0x1b4   : > { %3447 = vmatmul.mubr.msk.f32.gmra.mxu1 %vm422_vm0, %v712_v39 }
 0x1b5   : > { %1015 = vmatprep.mubr.f32.mxu1 %v4907_v0 }
 0x1b7   : > { %v713_v40 = vpop.trf.xlu1 }
 0x1b8   : > { %3448 = vmatmul.mubr.msk.f32.gmra.mxu1 %vm422_vm0, %v713_v40 }
 0x1b9   : > { %1021 = vmatprep.mubr.f32.mxu1 %v4907_v0 }
 0x1bb   : > { %v714_v41 = vpop.trf.xlu1 }
 0x1bc   : > { %3449 = vmatmul.mubr.msk.f32.gmra.mxu1 %vm422_vm0, %v714_v41 }
 0x1bd   : > { %1027 = vmatprep.mubr.f32.mxu1 %v4907_v0 }
 0x1bf   : > { %v715_v42 = vpop.trf.xlu1 }
 0x1c0   : > { %3450 = vmatmul.mubr.msk.f32.gmra.mxu1 %vm422_vm0, %v715_v42 }
 0x1c1   : > { %1033 = vmatprep.mubr.f32.mxu1 %v4907_v0 }
 0x1c3   : > { %v716_v43 = vpop.trf.xlu1 }
 0x1c4   : > { %3451 = vmatmul.mubr.msk.f32.gmra.mxu1 %vm422_vm0, %v716_v43 }
 0x1c5   : > { %1039 = vmatprep.mubr.f32.mxu1 %v4907_v0 }
 0x1c7   : > { %v717_v44 = vpop.trf.xlu1 }
 0x1c8   : > { %3452 = vmatmul.mubr.msk.f32.gmra.mxu1 %vm422_vm0, %v717_v44 }
 0x1c9   : > { %1045 = vmatprep.mubr.f32.mxu1 %v4907_v0 }
 0x1cb   : > { %v718_v45 = vpop.trf.xlu1 }
 0x1cc   : > { %3453 = vmatmul.mubr.msk.f32.gmra.mxu1 %vm422_vm0, %v718_v45 }
 0x1cd   : > { %1051 = vmatprep.mubr.f32.mxu1 %v4907_v0 }
 0x1cf   : > { %v719_v46 = vpop.trf.xlu1 }
 0x1d0   : > { %3454 = vmatmul.mubr.msk.f32.gmra.mxu1 %vm422_vm0, %v719_v46 }
 0x1d1   : > { %1057 = vmatprep.mubr.f32.mxu1 %v4907_v0 }
 0x1d3   : > { %v720_v47 = vpop.trf.xlu1 }
 0x1d4   : > { %3455 = vmatmul.mubr.msk.f32.gmra.mxu1 %vm422_vm0, %v720_v47 }
 0x1d5   : > { %1063 = vmatprep.mubr.f32.mxu1 %v4907_v0 }
 0x1d7   : > { %v721_v48 = vpop.trf.xlu1 }
 0x1d8   : > { %3456 = vmatmul.mubr.msk.f32.gmra.mxu1 %vm422_vm0, %v721_v48 }
 0x1d9   : > { %1069 = vmatprep.mubr.f32.mxu1 %v4907_v0 }
 0x1db   : > { %v722_v49 = vpop.trf.xlu1 }
 0x1dc   : > { %3457 = vmatmul.mubr.msk.f32.gmra.mxu1 %vm422_vm0, %v722_v49 }
 0x1dd   : > { %1766 = vmatprep.mubr.f32.mxu1 %v4907_v0 }
 0x220   : > { %v4054_v50 = vpop.f32.mrf.mxu1 }
 0x222   : > { %v4056_v51 = vpop.f32.mrf.mxu1 }
 0x224   : > { %v4058_v52 = vpop.f32.mrf.mxu1 }
 0x226   : > { %v4060_v53 = vpop.f32.mrf.mxu1 }
 0x228   : > { %v4062_v54 = vpop.f32.mrf.mxu1 }
 0x22a   : > { %v4064_v55 = vpop.f32.mrf.mxu1 }
 0x22c   : > { %v4066_v56 = vpop.f32.mrf.mxu1 }
 0x22e   : > { %v4068_v57 = vpop.f32.mrf.mxu1 }
 0x22f   : > { %v1085_v49 = vmax.f32 %v4066_v56, %v4068_v57 }
 0x230   : > { %v4070_v58 = vpop.f32.mrf.mxu1 }
 0x232   : > { %v4072_v59 = vpop.f32.mrf.mxu1 }
 0x233   : > { %v1088_v45 = vmax.f32 %v4070_v58, %v4072_v59 }
 0x234   : > { %v4074_v60 = vpop.f32.mrf.mxu1 }
 0x236   : > { %v4076_v61 = vpop.f32.mrf.mxu1 }
 0x237   : > { %v1091_v41 = vmax.f32 %v4074_v60, %v4076_v61 }
 0x238   : > { %v4078_v62 = vpop.f32.mrf.mxu1 }
 0x23a   : > { %v4080_v63 = vpop.f32.mrf.mxu1 }
 0x23b   : > { %v1094_v36 = vmax.f32 %v4078_v62, %v4080_v63 }
 0x23c   : > { %v4082_v1 = vpop.f32.mrf.mxu1 }
 0x23e   : > { %v4084_v2 = vpop.f32.mrf.mxu1 }
 0x23f   : > { %v1097_v3 = vmax.f32 %v4082_v1, %v4084_v2 }
 0x240   : > { %v4088_v4 = vpop.f32.mrf.mxu1 }
 0x241   : > { %1098 = vmax.xlane.f32.xlu1 %v1097_v3 }
 0x242   : > { %v4090_v5 = vpop.f32.mrf.mxu1 }
 0x243   : > { %v1100_v33 = vmax.f32 %v4088_v4, %v4090_v5 }
 0x244   : > { %v4092_v6 = vpop.f32.mrf.mxu1 }
 0x246   : > { %v4094_v7 = vpop.f32.mrf.mxu1 }
 0x247   : > { %v1103_v30 = vmax.f32 %v4092_v6, %v4094_v7 }
 0x248   : > { %v4096_v8 = vpop.f32.mrf.mxu1 }
 0x24a   : > { %v4098_v9 = vpop.f32.mrf.mxu1 }
 0x24b   : > { %v1106_v27 = vmax.f32 %v4096_v8, %v4098_v9 }
 0x24c   : > { %v4100_v10 = vpop.f32.mrf.mxu1 }
 0x24e   : > { %v4102_v11 = vpop.f32.mrf.mxu1 }
 0x24f   : > { %v1109_v12 = vmax.f32 %v4100_v10, %v4102_v11 }
 0x250   : > { %v4106_v13 = vpop.f32.mrf.mxu1 }
 0x251   : > { %1110 = vmax.xlane.f32.xlu0 %v1109_v12 }
 0x252   : > { %v4108_v14 = vpop.f32.mrf.mxu1 }
 0x253   : > { %v1112_v15 = vmax.f32 %v4106_v13, %v4108_v14 }
 0x254   : > { %v4112_v16 = vpop.f32.mrf.mxu1 }
 0x255   : > { %1113 = vmax.xlane.f32.xlu0 %v1112_v15  ;;  %v1082_v15 = vmax.f32 %v4062_v54, %v4064_v55 }
 0x256   : > { %v4114_v17 = vpop.f32.mrf.mxu1 }
 0x257   : > { %v1115_v18 = vmax.f32 %v4112_v16, %v4114_v17 }
 0x258   : > { %v4118_v19 = vpop.f32.mrf.mxu1 }
 0x259   : > { %1116 = vmax.xlane.f32.xlu0 %v1115_v18 }
 0x25a   : > { %v4120_v20 = vpop.f32.mrf.mxu1 }
 0x25b   : > { %v1118_v21 = vmax.f32 %v4118_v19, %v4120_v20 }
 0x25c   : > { %v4124_v22 = vpop.f32.mrf.mxu1 }
 0x25d   : > { %1119 = vmax.xlane.f32.xlu0 %v1118_v21 }
 0x25e   : > { %v4126_v23 = vpop.f32.mrf.mxu1 }
 0x25f   : > { %v1121_v24 = vmax.f32 %v4124_v22, %v4126_v23 }
 0x260   : > { %v4130_v25 = vpop.f32.mrf.mxu1 }
 0x261   : > { %4947 = vst [vmem:[#allocation6_spill] sm:$0xff] %v4130_v25  ;;  %1122 = vmax.xlane.f32.xlu0 %v1121_v24  ;;  %v1079_v24 = vmax.f32 %v4058_v52, %v4060_v53 }
 0x262   : > { %v4132_v26 = vpop.f32.mrf.mxu1 }
 0x263   : > { %4948 = vst [vmem:[#allocation7_spill] sm:$0xff] %v4132_v26  ;;  %v1124_v47 = vmax.f32 %v4130_v25, %v4132_v26 }
 0x264   : > { %v4136_v28 = vpop.f32.mrf.mxu1 }
 0x265   : > { %4949 = vst [vmem:[#allocation8_spill] sm:$0xff] %v4136_v28  ;;  %1107 = vmax.xlane.f32.xlu0 %v1106_v27 }
 0x266   : > { %v4138_v29 = vpop.f32.mrf.mxu1 }
 0x267   : > { %4950 = vst [vmem:[#allocation9_spill] sm:$0xff] %v4138_v29  ;;  %v1127_v43 = vmax.f32 %v4136_v28, %v4138_v29 }
 0x268   : > { %v4142_v31 = vpop.f32.mrf.mxu1 }
 0x269   : > { %4951 = vst [vmem:[#allocation10_spill] sm:$0xff] %v4142_v31  ;;  %1104 = vmax.xlane.f32.xlu0 %v1103_v30 }
 0x26a   : > { %v4144_v32 = vpop.f32.mrf.mxu1 }
 0x26b   : > { %4952 = vst [vmem:[#allocation11_spill] sm:$0xff] %v4144_v32  ;;  %v1130_v39 = vmax.f32 %v4142_v31, %v4144_v32 }
 0x26c   : > { %v4148_v34 = vpop.f32.mrf.mxu1 }
 0x26d   : > { %4953 = vst [vmem:[#allocation12_spill] sm:$0xff] %v4148_v34  ;;  %1101 = vmax.xlane.f32.xlu0 %v1100_v33  ;;  %v1076_v33 = vmax.f32 %v4054_v50, %v4056_v51 }
 0x26e   : > { %v4150_v35 = vpop.f32.mrf.mxu1 }
 0x26f   : > { %4954 = vst [vmem:[#allocation13_spill] sm:$0xff] %v4150_v35  ;;  %v1133_v37 = vmax.f32 %v4148_v34, %v4150_v35 }
 0x270   : > { %v4156_v38 = vpop.f32.mrf.mxu1 }
 0x271   : > { %1095 = vmax.xlane.f32.xlu0 %v1094_v36  ;;  %1134 = vmax.xlane.f32.xlu1 %v1133_v37 }
 0x272   : > { %v4160_v40 = vpop.f32.mrf.mxu1 }
 0x274   : > { %v4164_v42 = vpop.f32.mrf.mxu1 }
 0x275   : > { %1092 = vmax.xlane.f32.xlu0 %v1091_v41  ;;  %1131 = vmax.xlane.f32.xlu1 %v1130_v39 }
 0x276   : > { %v4168_v44 = vpop.f32.mrf.mxu1 }
 0x278   : > { %v4172_v46 = vpop.f32.mrf.mxu1 }
 0x279   : > { %4955 = vst [vmem:[#allocation14_spill] sm:$0xff] %v4172_v46  ;;  %1089 = vmax.xlane.f32.xlu0 %v1088_v45  ;;  %1128 = vmax.xlane.f32.xlu1 %v1127_v43 }
 0x27a   : > { %v4176_v48 = vpop.f32.mrf.mxu1 }
 0x27b   : > { %4956 = vst [vmem:[#allocation15_spill] sm:$0xff] %v4176_v48 }
 0x27c   : > { %v4180_v3 = vpop.f32.mrf.mxu1 }
 0x27d   : > { %4957 = vst [vmem:[#allocation16_spill] sm:$0xff] %v4180_v3  ;;  %1086 = vmax.xlane.f32.xlu0 %v1085_v49  ;;  %1125 = vmax.xlane.f32.xlu1 %v1124_v47 }
 0x27e   : > { %v4182_v12 = vpop.f32.mrf.mxu1 }
 0x27f   : > { %4958 = vst [vmem:[#allocation17_spill] sm:$0xff] %v4182_v12  ;;  %v1145_v28 = vmax.f32 %v4180_v3, %v4182_v12 }
 0x280   : > { %v4186_v18 = vpop.f32.mrf.mxu1 }
 0x281   : > { %1083 = vmax.xlane.f32.xlu0 %v1082_v15 }
 0x282   : > { %v4188_v21 = vpop.f32.mrf.mxu1 }
 0x284   : > { %v4192_v27 = vpop.f32.mrf.mxu1 }
 0x285   : > { %4959 = vst [vmem:[#allocation18_spill] sm:$0xff] %v4192_v27  ;;  %1080 = vmax.xlane.f32.xlu0 %v1079_v24 }
 0x286   : > { %v4194_v30 = vpop.f32.mrf.mxu1 }
 0x287   : > { %4960 = vst [vmem:[#allocation19_spill] sm:$0xff] %v4194_v30  ;;  %v1151_v29 = vmax.f32 %v4192_v27, %v4194_v30 }
 0x288   : > { %v4198_v36 = vpop.f32.mrf.mxu1 }
 0x289   : > { %1077 = vmax.xlane.f32.xlu0 %v1076_v33 }
 0x28a   : > { %v4200_v37 = vpop.f32.mrf.mxu1 }
 0x28b   : > { %v1154_v39 = vmax.f32 %v4198_v36, %v4200_v37 }
 0x28c   : > { %v4204_v41 = vpop.f32.mrf.mxu1 }
 0x28d   : > { %1155 = vmax.xlane.f32.xlu0 %v1154_v39 }
 0x28e   : > { %v4206_v43 = vpop.f32.mrf.mxu1 }
 0x28f   : > { %4961 = vst [vmem:[#allocation20_spill] sm:$0xff] %v4206_v43  ;;  %v1157_v45 = vmax.f32 %v4204_v41, %v4206_v43 }
 0x290   : > { %v4210_v47 = vpop.f32.mrf.mxu1 }
 0x291   : > { %1158 = vmax.xlane.f32.xlu0 %v1157_v45 }
 0x292   : > { %v4212_v49 = vpop.f32.mrf.mxu1 }
 0x293   : > { %v1160_v15 = vmax.f32 %v4210_v47, %v4212_v49 }
 0x294   : > { %v4216_v24 = vpop.f32.mrf.mxu1 }
 0x295   : > { %1161 = vmax.xlane.f32.xlu0 %v1160_v15 }
 0x296   : > { %v4218_v33 = vpop.f32.mrf.mxu1 }
 0x297   : > { %v1163_v39 = vmax.f32 %v4216_v24, %v4218_v33 }
 0x298   : > { %v4222_v0 = vpop.f32.mrf.mxu1 }
 0x299   : > { %1164 = vmax.xlane.f32.xlu0 %v1163_v39  ;;  %v1148_v39 = vmax.f32 %v4186_v18, %v4188_v21 }
 0x29a   : > { %v4224_v26 = vpop.f32.mrf.mxu1 }
 0x29b   : > { %v1166_v45 = vmax.f32 %v4222_v0, %v4224_v26 }
 0x29c   : > { %v4228_v25 = vpop.f32.mrf.mxu1 }
 0x29d   : > { %1167 = vmax.xlane.f32.xlu0 %v1166_v45  ;;  %v1142_v45 = vmax.f32 %v4172_v46, %v4176_v48 }
 0x29e   : > { %v4230_v32 = vpop.f32.mrf.mxu1 }
 0x29f   : > { %v1169_v15 = vmax.f32 %v4228_v25, %v4230_v32 }
 0x2a1   : > { %1170 = vmax.xlane.f32.xlu0 %v1169_v15 }
 0x2a5   : > { %1152 = vmax.xlane.f32.xlu0 %v1151_v29 }
 0x2a9   : > { %1149 = vmax.xlane.f32.xlu0 %v1148_v39 }
 0x2ad   : > { %1146 = vmax.xlane.f32.xlu0 %v1145_v28 }
 0x2b1   : > { %1143 = vmax.xlane.f32.xlu0 %v1142_v45 }
 0x2da   : > { %v1111_v31 = vpop.xlane.xlu0 %1110 }
 0x2de   : > { %v1114_v35 = vpop.xlane.xlu0 %1113 }
 0x2df   : > { %v1196_v28 = vsub.f32 %v4106_v13, %v1114_v35  ;;  %v1197_v46 = vsub.f32 %v4108_v14, %v1114_v35  ;;  %v1194_v13 = vsub.f32 %v4100_v10, %v1111_v31 }
 0x2e2   : > { %v1117_v34 = vpop.xlane.xlu0 %1116 }
 0x2e3   : > { %v1198_v15 = vsub.f32 %v4112_v16, %v1117_v34  ;;  %v1199_v30 = vsub.f32 %v4114_v17, %v1117_v34  ;;  %v1284_v34 = vmul.f32 1.442695, %v1196_v28 }
 0x2e5   : > { %v1288_v29 = vmul.f32 1.442695, %v1198_v15  ;;  %v1290_v27 = vmul.f32 1.442695, %v1199_v30 }
 0x2e6   : > { %v1120_v43 = vpop.xlane.xlu0 %1119 }
 0x2e7   : > { %3575 = vpow2.f32 %v1288_v29  ;;  %v1200_v39 = vsub.f32 %v4118_v19, %v1120_v43  ;;  %v1201_v12 = vsub.f32 %v4120_v20, %v1120_v43  ;;  %v1286_v19 = vmul.f32 1.442695, %v1197_v46 }
 0x2e8   : > { %3577 = vpow2.f32 %v1290_v27  ;;  %v1195_v20 = vsub.f32 %v4102_v11, %v1111_v31 }
 0x2e9   : > { %v1292_v48 = vmul.f32 1.442695, %v1200_v39  ;;  %v1294_v45 = vmul.f32 1.442695, %v1201_v12 }
 0x2ea   : > { %v1123_v3 = vpop.xlane.xlu0 %1122 }
 0x2eb   : > { %3579 = vpow2.f32 %v1292_v48  ;;  %v1202_v16 = vsub.f32 %v4124_v22, %v1123_v3  ;;  %v1203_v17 = vsub.f32 %v4126_v23, %v1123_v3  ;;  %v1280_v23 = vmul.f32 1.442695, %v1194_v13 }
 0x2ec   : > { %3581 = vpow2.f32 %v1294_v45  ;;  %v1282_v48 = vmul.f32 1.442695, %v1195_v20 }
 0x2ed   : > { %v1296_v30 = vmul.f32 1.442695, %v1202_v16  ;;  %v1298_v15 = vmul.f32 1.442695, %v1203_v17 }
 0x2ee   : > { %v1108_v29 = vpop.xlane.xlu0 %1107 }
 0x2ef   : > { %3583 = vpow2.f32 %v1296_v30  ;;  %v1192_v27 = vsub.f32 %v4096_v8, %v1108_v29  ;;  %v1193_v11 = vsub.f32 %v4098_v9, %v1108_v29 }
 0x2f0   : > { %3585 = vpow2.f32 %v1298_v15 }
 0x2f1   : > { %3587 = vpow2.f32 %v1284_v34  ;;  %v1276_v28 = vmul.f32 1.442695, %v1192_v27  ;;  %v1278_v17 = vmul.f32 1.442695, %v1193_v11 }
 0x2f2   : > { %3589 = vpow2.f32 %v1286_v19  ;;  %v1105_v14 = vpop.xlane.xlu0 %1104 }
 0x2f3   : > { %3591 = vpow2.f32 %v1280_v23  ;;  %v1190_v16 = vsub.f32 %v4092_v6, %v1105_v14  ;;  %v1191_v34 = vsub.f32 %v4094_v7, %v1105_v14 }
 0x2f4   : > { %v4252_v35 = vpop.eup %3575  ;;  %3593 = vpow2.f32 %v1282_v48  ;;  %v1099_v48 = vpop.xlane.xlu1 %1098 }
 0x2f5   : > { %v4254_v22 = vpop.eup %3577  ;;  %3595 = vpow2.f32 %v1276_v28  ;;  %v1272_v13 = vmul.f32 1.442695, %v1190_v16  ;;  %v1274_v7 = vmul.f32 1.442695, %v1191_v34 }
 0x2f6   : > { %v1102_v3 = vpop.xlane.xlu0 %1101  ;;  %v1403_v46 = vadd.f32 %v4254_v22, %v4252_v35  ;;  %3597 = vpow2.f32 %v1278_v17 }
 0x2f7   : > { %v1188_v6 = vsub.f32 %v4088_v4, %v1102_v3  ;;  %v1189_v14 = vsub.f32 %v4090_v5, %v1102_v3  ;;  %v1187_v4 = vsub.f32 %v4084_v2, %v1099_v48  ;;  %v1139_v5 = vmax.f32 %v4164_v42, %v4168_v44 }
 0x2f8   : > { %v4258_v12 = vpop.eup %3579  ;;  %1404 = vadd.xlane.f32.xlu0 %v1403_v46 }
 0x2f9   : > { %v4261_v10 = vpop.eup %3581 }
 0x2fa   : > { %v1096_v31 = vpop.xlane.xlu0 %1095  ;;  %v1406_v43 = vadd.f32 %v4261_v10, %v4258_v12 }
 0x2fb   : > { %v1184_v16 = vsub.f32 %v4078_v62, %v1096_v31  ;;  %v1185_v34 = vsub.f32 %v4080_v63, %v1096_v31 }
 0x2fc   : > { %v4266_v39 = vpop.eup %3583  ;;  %1407 = vadd.xlane.f32.xlu0 %v1406_v43  ;;  %v1270_v43 = vmul.f32 1.442695, %v1189_v14 }
 0x2fd   : > { %v4268_v45 = vpop.eup %3585  ;;  %v1262_v62 = vmul.f32 1.442695, %v1185_v34 }
 0x2fe   : > { %v4271_v8 = vpop.eup %3587  ;;  %v1093_v30 = vpop.xlane.xlu0 %1092  ;;  %v1409_v9 = vadd.f32 %v4268_v45, %v4266_v39 }
 0x2ff   : > { %v4276_v15 = vpop.eup %3589  ;;  %v1182_v19 = vsub.f32 %v4074_v60, %v1093_v30  ;;  %v1183_v29 = vsub.f32 %v4076_v61, %v1093_v30  ;;  %v1186_v60 = vsub.f32 %v4082_v1, %v1099_v48  ;;  %v1268_v61 = vmul.f32 1.442695, %v1188_v6 }
 0x300   : > { %1410 = vadd.xlane.f32.xlu0 %v1409_v9  ;;  %v1400_v27 = vadd.f32 %v4276_v15, %v4271_v8  ;;  %v4285_v11 = vpop.eup %3591  ;;  %v1260_v6 = vmul.f32 1.442695, %v1184_v16 }
 0x301   : > { %v1256_v20 = vmul.f32 1.442695, %v1182_v19  ;;  %v1258_v23 = vmul.f32 1.442695, %v1183_v29  ;;  %v4290_v3 = vpop.eup %3593  ;;  %v1264_v30 = vmul.f32 1.442695, %v1186_v60 }
 0x302   : > { %v1090_v46 = vpop.xlane.xlu0 %1089  ;;  %v1266_v19 = vmul.f32 1.442695, %v1187_v4 }
 0x303   : > { %3599 = vpow2.f32 %v1256_v20  ;;  %v1181_v63 = vsub.f32 %v4072_v59, %v1090_v46  ;;  %v1136_v20 = vmax.f32 %v4156_v38, %v4160_v40 }
 0x304   : > { %3601 = vpow2.f32 %v1258_v23  ;;  %1401 = vadd.xlane.f32.xlu0 %v1400_v27 }
 0x305   : > { %3603 = vpow2.f32 %v1272_v13  ;;  %v1397_v13 = vadd.f32 %v4290_v3, %v4285_v11  ;;  %v1254_v4 = vmul.f32 1.442695, %v1181_v63 }
 0x306   : > { %3605 = vpow2.f32 %v1274_v7  ;;  %v1087_v28 = vpop.xlane.xlu0 %1086 }
 0x307   : > { %v1178_v17 = vsub.f32 %v4066_v56, %v1087_v28  ;;  %v1179_v1 = vsub.f32 %v4068_v57, %v1087_v28  ;;  %3607 = vpow2.f32 %v1268_v61  ;;  %v4298_v56 = vpop.eup %3595  ;;  %v1180_v57 = vsub.f32 %v4070_v58, %v1090_v46 }
 0x308   : > { %1140 = vmax.xlane.f32.xlu0 %v1139_v5  ;;  %3609 = vpow2.f32 %v1270_v43  ;;  %v4304_v23 = vpop.eup %3597 }
 0x309   : > { %v1248_v2 = vmul.f32 1.442695, %v1178_v17  ;;  %v1250_v9 = vmul.f32 1.442695, %v1179_v1  ;;  %v1252_v58 = vmul.f32 1.442695, %v1180_v57 }
 0x30a   : > { %v1084_v29 = vpop.xlane.xlu0 %1083 }
 0x30b   : > { %3611 = vpow2.f32 %v1248_v2  ;;  %v1176_v59 = vsub.f32 %v4062_v54, %v1084_v29  ;;  %v1177_v43 = vsub.f32 %v4064_v55, %v1084_v29  ;;  %v578_v55 = vld [vmem:[%s4900_s6] sm:$0xff] }
 0x30c   : > { %3613 = vpow2.f32 %v1250_v9  ;;  %1398 = vadd.xlane.f32.xlu0 %v1397_v13  ;;  %3425 = vmatmul.mubr.msk.f32.vlgmr.msra.gmra.mxu0 %vm422_vm0, %v578_v55 }
 0x30d   : > { %3615 = vpow2.f32 %v1264_v30  ;;  %v1244_v54 = vmul.f32 1.442695, %v1176_v59  ;;  %v1246_v1 = vmul.f32 1.442695, %v1177_v43 }
 0x30e   : > { %3617 = vpow2.f32 %v1266_v19  ;;  %v1081_v31 = vpop.xlane.xlu0 %1080 }
 0x30f   : > { %3619 = vpow2.f32 %v1260_v6  ;;  %v1174_v48 = vsub.f32 %v4058_v52, %v1081_v31  ;;  %v1175_v7 = vsub.f32 %v4060_v53, %v1081_v31  ;;  %v1394_v53 = vadd.f32 %v4304_v23, %v4298_v56 }
 0x310   : > { %v4308_v14 = vpop.eup %3599  ;;  %3621 = vpow2.f32 %v1262_v62  ;;  %1137 = vmax.xlane.f32.xlu0 %v1136_v20 }
 0x311   : > { %v4310_v27 = vpop.eup %3601  ;;  %v1240_v46 = vmul.f32 1.442695, %v1174_v48  ;;  %v1242_v60 = vmul.f32 1.442695, %v1175_v7 }
 0x312   : > { %v4313_v61 = vpop.eup %3603  ;;  %v1078_v28 = vpop.xlane.xlu0 %1077  ;;  %v1379_v52 = vadd.f32 %v4310_v27, %v4308_v14 }
 0x313   : > { %v4320_v5 = vpop.eup %3605  ;;  %3623 = vpow2.f32 %v1240_v46  ;;  %v1172_v16 = vsub.f32 %v4054_v50, %v1078_v28  ;;  %v1173_v34 = vsub.f32 %v4056_v51, %v1078_v28 }
 0x314   : > { %3625 = vpow2.f32 %v1242_v60  ;;  %1380 = vadd.xlane.f32.xlu1 %v1379_v52  ;;  %1395 = vadd.xlane.f32.xlu0 %v1394_v53  ;;  %v4326_v17 = vpop.eup %3607  ;;  %v1391_v2 = vadd.f32 %v4320_v5, %v4313_v61 }
 0x315   : > { %3627 = vpow2.f32 %v1252_v58  ;;  %v4332_v9 = vpop.eup %3609  ;;  %v1236_v29 = vmul.f32 1.442695, %v1172_v16  ;;  %v1238_v6 = vmul.f32 1.442695, %v1173_v34 }
 0x316   : > { %3629 = vpow2.f32 %v1254_v4  ;;  %v1156_v30 = vpop.xlane.xlu0 %1155  ;;  %v1388_v57 = vadd.f32 %v4332_v9, %v4326_v17 }
 0x317   : > { %3631 = vpow2.f32 %v1244_v54  ;;  %v1224_v59 = vsub.f32 %v4198_v36, %v1156_v30  ;;  %v1225_v4 = vsub.f32 %v4200_v37, %v1156_v30 }
 0x318   : > { %v4334_v19 = vpop.eup %3611  ;;  %1392 = vadd.xlane.f32.xlu0 %v1391_v2  ;;  %3633 = vpow2.f32 %v1246_v1 }
 0x319   : > { %v4336_v50 = vpop.eup %3613  ;;  %3635 = vpow2.f32 %v1236_v29  ;;  %v1340_v54 = vmul.f32 1.442695, %v1224_v59  ;;  %v1342_v55 = vmul.f32 1.442695, %v1225_v4 }
 0x31a   : > { %v4338_v13 = vpop.eup %3615  ;;  %v4340_v51 = vpop.xlane.xlu0 %1158  ;;  %v1373_v62 = vadd.f32 %v4336_v50, %v4334_v19  ;;  %3637 = vpow2.f32 %v1238_v6 }
 0x31b   : > { %v4346_v63 = vpop.eup %3617  ;;  %3639 = vpow2.f32 %v1340_v54 }
 0x31c   : > { %v4348_v31 = vpop.eup %3619  ;;  %1374 = vadd.xlane.f32.xlu1 %v1373_v62  ;;  %1389 = vadd.xlane.f32.xlu0 %v1388_v57  ;;  %v1385_v7 = vadd.f32 %v4346_v63, %v4338_v13  ;;  %3641 = vpow2.f32 %v1342_v55 }
 0x31d   : > { %v4350_v20 = vpop.eup %3621 }
 0x31e   : > { %v1162_v48 = vpop.xlane.xlu0 %1161  ;;  %v1382_v52 = vadd.f32 %v4350_v20, %v4348_v31 }
 0x31f   : > { %v1228_v36 = vsub.f32 %v4210_v47, %v1162_v48  ;;  %v1229_v1 = vsub.f32 %v4212_v49, %v1162_v48 }
 0x320   : > { %v4354_v58 = vpop.eup %3623  ;;  %1386 = vadd.xlane.f32.xlu0 %v1385_v7 }
 0x321   : > { %v4357_v46 = vpop.eup %3625  ;;  %v1348_v6 = vmul.f32 1.442695, %v1228_v36  ;;  %v1350_v49 = vmul.f32 1.442695, %v1229_v1 }
 0x322   : > { %v4359_v60 = vpop.eup %3627  ;;  %v1165_v43 = vpop.xlane.xlu0 %1164  ;;  %v1367_v28 = vadd.f32 %v4357_v46, %v4354_v58 }
 0x323   : > { %v4366_v53 = vpop.eup %3629  ;;  %v1230_v47 = vsub.f32 %v4216_v24, %v1165_v43  ;;  %v1231_v48 = vsub.f32 %v4218_v33, %v1165_v43  ;;  %v1226_v24 = vsub.f32 %v4204_v41, %v4340_v51  ;;  %v4962_v43 = vld [vmem:[#allocation20_spill] sm:$0xff]  ;;  %v4963_v41 = vld [vmem:[#allocation18_spill] sm:$0xff] }
 0x324   : > { %1368 = vadd.xlane.f32.xlu1 %v1367_v28  ;;  %1383 = vadd.xlane.f32.xlu0 %v1382_v52  ;;  %v4369_v16 = vpop.eup %3631  ;;  %v1376_v34 = vadd.f32 %v4366_v53, %v4359_v60  ;;  %v1227_v36 = vsub.f32 %v4962_v43, %v4340_v51 }
 0x325   : > { %v4374_v30 = vpop.eup %3633  ;;  %v1352_v52 = vmul.f32 1.442695, %v1230_v47  ;;  %v1354_v55 = vmul.f32 1.442695, %v1231_v48 }
 0x326   : > { %v1168_v37 = vpop.xlane.xlu0 %1167  ;;  %v4379_v7 = vpop.eup %3635  ;;  %v1370_v4 = vadd.f32 %v4374_v30, %v4369_v16 }
 0x327   : > { %v1232_v2 = vsub.f32 %v4222_v0, %v1168_v37  ;;  %v1233_v29 = vsub.f32 %v4224_v26, %v1168_v37  ;;  %v4384_v0 = vpop.eup %3637 }
 0x328   : > { %1377 = vadd.xlane.f32.xlu0 %v1376_v34  ;;  %v1346_v34 = vmul.f32 1.442695, %v1227_v36 }
 0x329   : > { %v1356_v62 = vmul.f32 1.442695, %v1232_v2  ;;  %v1358_v57 = vmul.f32 1.442695, %v1233_v29  ;;  %v4964_v2 = vld [vmem:[#allocation19_spill] sm:$0xff] }
 0x32a   : > { %v1171_v59 = vpop.xlane.xlu0 %1170 }
 0x32b   : > { %3643 = vpow2.f32 %v1356_v62  ;;  %v1234_v26 = vsub.f32 %v4228_v25, %v1171_v59  ;;  %v1235_v28 = vsub.f32 %v4230_v32, %v1171_v59  ;;  %v1364_v25 = vadd.f32 %v4384_v0, %v4379_v7  ;;  %v4398_v62 = vpop.eup %3639 }
 0x32c   : > { %3645 = vpow2.f32 %v1358_v57  ;;  %1371 = vadd.xlane.f32.xlu0 %v1370_v4  ;;  %v1344_v32 = vmul.f32 1.442695, %v1226_v24  ;;  %4965 = vst [vmem:[#allocation20_spill] sm:$0xff] %v4398_v62 }
 0x32d   : > { %3647 = vpow2.f32 %v1348_v6  ;;  %v1360_v54 = vmul.f32 1.442695, %v1234_v26  ;;  %v1362_v33 = vmul.f32 1.442695, %v1235_v28  ;;  %v4400_v26 = vpop.eup %3641  ;;  %v4967_v28 = vld [vmem:[#allocation16_spill] sm:$0xff] }
 0x32e   : > { %3649 = vpow2.f32 %v1350_v49  ;;  %v1153_v1 = vpop.xlane.xlu0 %1152  ;;  %4966 = vst [vmem:[#allocation18_spill] sm:$0xff] %v4400_v26 }
 0x32f   : > { %3651 = vpow2.f32 %v1360_v54  ;;  %v1222_v37 = vsub.f32 %v4963_v41, %v1153_v1  ;;  %v1223_v29 = vsub.f32 %v4964_v2, %v1153_v1 }
 0x330   : > { %3653 = vpow2.f32 %v1362_v33  ;;  %1365 = vadd.xlane.f32.xlu0 %v1364_v25 }
 0x331   : > { %3655 = vpow2.f32 %v1352_v52  ;;  %v1336_v57 = vmul.f32 1.442695, %v1222_v37  ;;  %v1338_v59 = vmul.f32 1.442695, %v1223_v29  ;;  %v4968_v52 = vld [vmem:[#allocation17_spill] sm:$0xff]  ;;  %v4971_v37 = vld [vmem:[#allocation15_spill] sm:$0xff] }
 0x332   : > { %3657 = vpow2.f32 %v1354_v55  ;;  %v1150_v6 = vpop.xlane.xlu0 %1149 }
 0x333   : > { %v1220_v51 = vsub.f32 %v4186_v18, %v1150_v6  ;;  %v1221_v47 = vsub.f32 %v4188_v21, %v1150_v6  ;;  %3659 = vpow2.f32 %v1344_v32  ;;  %v4970_v32 = vld [vmem:[#allocation14_spill] sm:$0xff] }
 0x334   : > { %3661 = vpow2.f32 %v1346_v34 }
 0x335   : > { %v1332_v49 = vmul.f32 1.442695, %v1220_v51  ;;  %v1334_v48 = vmul.f32 1.442695, %v1221_v47 }
 0x336   : > { %v1147_v4 = vpop.xlane.xlu0 %1146 }
 0x337   : > { %3663 = vpow2.f32 %v1332_v49  ;;  %v1218_v24 = vsub.f32 %v4967_v28, %v1147_v4  ;;  %v1219_v54 = vsub.f32 %v4968_v52, %v1147_v4  ;;  %v1442_v28 = vadd.f32 %v4400_v26, %v4398_v62 }
 0x338   : > { %v4404_v33 = vpop.eup %3643  ;;  %3665 = vpow2.f32 %v1334_v48 }
 0x339   : > { %v4406_v18 = vpop.eup %3645  ;;  %3667 = vpow2.f32 %v1336_v57  ;;  %v1328_v21 = vmul.f32 1.442695, %v1218_v24  ;;  %v1330_v36 = vmul.f32 1.442695, %v1219_v54 }
 0x33a   : > { %v4408_v43 = vpop.eup %3647  ;;  %3669 = vpow2.f32 %v1338_v59  ;;  %v1144_v55 = vpop.xlane.xlu0 %1143  ;;  %v1454_v1 = vadd.f32 %v4406_v18, %v4404_v33 }
 0x33b   : > { %4969 = vst [vmem:[#allocation19_spill] sm:$0xff] %v4408_v43  ;;  %v4412_v25 = vpop.eup %3649  ;;  %v1216_v41 = vsub.f32 %v4970_v32, %v1144_v55  ;;  %v1217_v34 = vsub.f32 %v4971_v37, %v1144_v55  ;;  %3671 = vpow2.f32 %v1328_v21 }
 0x33c   : > { %v4416_v2 = vpop.eup %3651  ;;  %1455 = vadd.xlane.f32.xlu0 %v1454_v1  ;;  %3673 = vpow2.f32 %v1330_v36  ;;  %v1448_v49 = vadd.f32 %v4412_v25, %v4408_v43 }
 0x33d   : > { %v4418_v29 = vpop.eup %3653  ;;  %v1324_v6 = vmul.f32 1.442695, %v1216_v41  ;;  %v1326_v51 = vmul.f32 1.442695, %v1217_v34 }
 0x33e   : > { %v4420_v47 = vpop.eup %3655  ;;  %v1457_v57 = vadd.f32 %v4418_v29, %v4416_v2 }
 0x33f   : > { %v4426_v48 = vpop.eup %3657  ;;  %3675 = vpow2.f32 %v1324_v6 }
 0x340   : > { %3677 = vpow2.f32 %v1326_v51  ;;  %1458 = vadd.xlane.f32.xlu1 %v1457_v57  ;;  %1449 = vadd.xlane.f32.xlu0 %v1448_v49  ;;  %v4428_v59 = vpop.eup %3659  ;;  %v1451_v4 = vadd.f32 %v4426_v48, %v4420_v47 }
 0x341   : > { %4972 = vst [vmem:[#allocation16_spill] sm:$0xff] %v4428_v59  ;;  %v4434_v24 = vpop.eup %3661 }
 0x342   : > { %4973 = vst [vmem:[#allocation17_spill] sm:$0xff] %v4434_v24  ;;  %v1445_v36 = vadd.f32 %v4434_v24, %v4428_v59  ;;  %v4986_v24 = vld [vmem:[#allocation9_spill] sm:$0xff] }
 0x344   : > { %v4436_v52 = vpop.eup %3663  ;;  %1452 = vadd.xlane.f32.xlu1 %v1451_v4  ;;  %1443 = vadd.xlane.f32.xlu0 %v1442_v28  ;;  %v1135_v4 = vpop.xlane.xlu1 %1134 }
 0x345   : > { %4974 = vst [vmem:[#allocation14_spill] sm:$0xff] %v4436_v52  ;;  %v4438_v54 = vpop.eup %3665 }
 0x346   : > { %4975 = vst [vmem:[#allocation15_spill] sm:$0xff] %v4438_v54  ;;  %v4440_v21 = vpop.eup %3667  ;;  %v1436_v55 = vadd.f32 %v4438_v54, %v4436_v52  ;;  %v4982_v52 = vld [vmem:[#allocation12_spill] sm:$0xff] }
 0x347   : > { %4976 = vst [vmem:[#allocation21_spill] sm:$0xff] %v4440_v21  ;;  %v4446_v1 = vpop.eup %3669  ;;  %v1210_v54 = vsub.f32 %v4982_v52, %v1135_v4 }
 0x348   : > { %4977 = vst [vmem:[#allocation22_spill] sm:$0xff] %v4446_v1  ;;  %1446 = vadd.xlane.f32.xlu1 %v1445_v36  ;;  %1437 = vadd.xlane.f32.xlu0 %v1436_v55  ;;  %v4448_v32 = vpop.eup %3671  ;;  %v1439_v41 = vadd.f32 %v4446_v1, %v4440_v21  ;;  %v1132_v55 = vpop.xlane.xlu1 %1131  ;;  %v4983_v21 = vld [vmem:[#allocation13_spill] sm:$0xff] }
 0x349   : > { %4978 = vst [vmem:[#allocation23_spill] sm:$0xff] %v4448_v32  ;;  %v4452_v37 = vpop.eup %3673  ;;  %v1211_v1 = vsub.f32 %v4983_v21, %v1135_v4  ;;  %v1312_v62 = vmul.f32 1.442695, %v1210_v54 }
 0x34a   : > { %4979 = vst [vmem:[#allocation24_spill] sm:$0xff] %v4452_v37  ;;  %v1433_v51 = vadd.f32 %v4452_v37, %v4448_v32 }
 0x34b   : > { %v1314_v52 = vmul.f32 1.442695, %v1211_v1 }
 0x34c   : > { %v4454_v34 = vpop.eup %3675  ;;  %1440 = vadd.xlane.f32.xlu1 %v1439_v41  ;;  %v1129_v32 = vpop.xlane.xlu1 %1128 }
 0x34d   : > { %4980 = vst [vmem:[#allocation25_spill] sm:$0xff] %v4454_v34  ;;  %v4456_v6 = vpop.eup %3677 }
 0x34e   : > { %4981 = vst [vmem:[#allocation26_spill] sm:$0xff] %v4456_v6  ;;  %v1430_v57 = vadd.f32 %v4456_v6, %v4454_v34  ;;  %v4984_v34 = vld [vmem:[#allocation10_spill] sm:$0xff] }
 0x34f   : > { %v1208_v6 = vsub.f32 %v4984_v34, %v1132_v55 }
 0x350   : > { %1434 = vadd.xlane.f32.xlu1 %v1433_v51  ;;  %1431 = vadd.xlane.f32.xlu0 %v1430_v57 }
 0x351   : > { %v1308_v4 = vmul.f32 1.442695, %v1208_v6 }
 0x381   : > { %v1405_v49 = vpop.xlane.xlu0 %1404 }
 0x385   : > { %v1408_v28 = vpop.xlane.xlu0 %1407 }
 0x386   : > { %3679 = vrcp.f32 %v1408_v28  ;;  %v4985_v28 = vld [vmem:[#allocation8_spill] sm:$0xff] }
 0x387   : > { %v1206_v26 = vsub.f32 %v4985_v28, %v1129_v32 }
 0x389   : > { %v1411_v36 = vpop.xlane.xlu0 %1410 }
 0x38a   : > { %3681 = vrcp.f32 %v1411_v36 }
 0x38b   : > { %3683 = vrcp.f32 %v1405_v49  ;;  %v1207_v49 = vsub.f32 %v4986_v24, %v1129_v32 }
 0x38d   : > { %v1402_v41 = vpop.xlane.xlu0 %1401 }
 0x38e   : > { %3685 = vrcp.f32 %v1402_v41  ;;  %v1304_v41 = vmul.f32 1.442695, %v1206_v26 }
 0x38f   : > { %3687 = vpow2.f32 %v1312_v62  ;;  %v1126_v62 = vpop.xlane.xlu1 %1125 }
 0x391   : > { %v1141_v37 = vpop.xlane.xlu0 %1140 }
 0x392   : > { %v1214_v51 = vsub.f32 %v4164_v42, %v1141_v37  ;;  %v1215_v57 = vsub.f32 %v4168_v44, %v1141_v37  ;;  %v4987_v37 = vld [vmem:[#allocation11_spill] sm:$0xff] }
 0x393   : > { %v3680_v21 = vpop.eup %3679  ;;  %v1209_v34 = vsub.f32 %v4987_v37, %v1132_v55 }
 0x394   : > { %v1320_v36 = vmul.f32 1.442695, %v1214_v51  ;;  %v1322_v59 = vmul.f32 1.442695, %v1215_v57  ;;  %v1306_v51 = vmul.f32 1.442695, %v1207_v49  ;;  %v1521_v6 = vmul.f32 %v3680_v21, %v4261_v10 }
 0x395   : > { %v1399_v43 = vpop.xlane.xlu0 %1398  ;;  %v1310_v55 = vmul.f32 1.442695, %v1209_v34  ;;  %v4989_v57 = vld [vmem:[#allocation7_spill] sm:$0xff] }
 0x396   : > { %3689 = vpow2.f32 %v1320_v36  ;;  %v1205_v28 = vsub.f32 %v4989_v57, %v1126_v62 }
 0x397   : > { %v3682_v54 = vpop.eup %3681  ;;  %3691 = vpow2.f32 %v1322_v59 }
 0x398   : > { %3693 = vrcp.f32 %v1399_v43  ;;  %v1523_v42 = vmul.f32 %v3682_v54, %v4268_v45  ;;  %v1522_v44 = vmul.f32 %v3682_v54, %v4266_v39  ;;  %v3684_v59 = vpop.eup %3683  ;;  %v4988_v45 = vld [vmem:[#allocation6_spill] sm:$0xff]  ;;  %v1302_v49 = vmul.f32 1.442695, %v1205_v28 }
 0x399   : > { %3695 = vpow2.f32 %v1314_v52  ;;  %v1138_v1 = vpop.xlane.xlu0 %1137  ;;  %v1204_v26 = vsub.f32 %v4988_v45, %v1126_v62 }
 0x39a   : > { %v1212_v24 = vsub.f32 %v4156_v38, %v1138_v1  ;;  %v1213_v32 = vsub.f32 %v4160_v40, %v1138_v1  ;;  %1556 = vmatprep.subr.mxu0 %v1523_v42  ;;  %3697 = vpow2.f32 %v1308_v4  ;;  %v1520_v38 = vmul.f32 %v3680_v21, %v4258_v12 }
 0x39b   : > { %1557 = vmatpush1.xpose.msra.mxu0 %v1522_v44  ;;  %3699 = vpow2.f32 %v1304_v41  ;;  %v1519_v40 = vmul.f32 %v3684_v59, %v4254_v22  ;;  %v3686_v10 = vpop.eup %3685  ;;  %v1300_v52 = vmul.f32 1.442695, %v1204_v26  ;;  %v1518_v4 = vmul.f32 %v3684_v59, %v4252_v35 }
 0x39c   : > { %v1316_v39 = vmul.f32 1.442695, %v1212_v24  ;;  %v1318_v43 = vmul.f32 1.442695, %v1213_v32  ;;  %1558 = vmatprep.subr.mxu0 %v1521_v6  ;;  %3701 = vpow2.f32 %v1306_v51  ;;  %v4480_v41 = vpop.eup %3687  ;;  %v1517_v42 = vmul.f32 %v3686_v10, %v4276_v15 }
 0x39d   : > { %v1396_v36 = vpop.xlane.xlu0 %1395  ;;  %v1516_v35 = vmul.f32 %v3686_v10, %v4271_v8  ;;  %v1381_v45 = vpop.xlane.xlu1 %1380 }
 0x39e   : > { %3703 = vpow2.f32 %v1316_v39 }
 0x39f   : > { %3705 = vpow2.f32 %v1318_v43  ;;  %1559 = vmatpush1.xpose.msra.mxu0 %v1520_v38 }
 0x3a0   : > { %3707 = vrcp.f32 %v1396_v36  ;;  %1560 = vmatprep.subr.mxu0 %v1519_v40 }
 0x3a1   : > { %3709 = vpow2.f32 %v1310_v55  ;;  %v1393_v54 = vpop.xlane.xlu0 %1392 }
 0x3a2   : > { %3711 = vrcp.f32 %v1393_v54 }
 0x3a3   : > { %v4483_v12 = vpop.eup %3689  ;;  %1561 = vmatpush1.xpose.msra.mxu0 %v1518_v4  ;;  %3713 = vpow2.f32 %v1300_v52 }
 0x3a4   : > { %v4485_v22 = vpop.eup %3691  ;;  %1562 = vmatprep.subr.mxu0 %v1517_v42  ;;  %3715 = vpow2.f32 %v1302_v49 }
 0x3a5   : > { %v3694_v21 = vpop.eup %3693  ;;  %v1390_v44 = vpop.xlane.xlu0 %1389  ;;  %v1427_v37 = vadd.f32 %v4485_v22, %v4483_v12 }
 0x3a6   : > { %v4490_v34 = vpop.eup %3695  ;;  %3717 = vrcp.f32 %v1390_v44  ;;  %v1515_v15 = vmul.f32 %v3694_v21, %v4290_v3  ;;  %v1514_v32 = vmul.f32 %v3694_v21, %v4285_v11  ;;  %v1375_v54 = vpop.xlane.xlu1 %1374 }
 0x3a7   : > { %1428 = vadd.xlane.f32.xlu1 %v1427_v37  ;;  %1563 = vmatpush1.xpose.msra.mxu0 %v1516_v35  ;;  %v4493_v51 = vpop.eup %3697  ;;  %v1421_v24 = vadd.f32 %v4490_v34, %v4480_v41 }
 0x3a8   : > { %1564 = vmatprep.subr.mxu0 %v1515_v15  ;;  %v4495_v62 = vpop.eup %3699 }
 0x3a9   : > { %v1387_v1 = vpop.xlane.xlu0 %1386  ;;  %v4500_v6 = vpop.eup %3701 }
 0x3aa   : > { %3719 = vrcp.f32 %v1387_v1  ;;  %v1415_v43 = vadd.f32 %v4500_v6, %v4495_v62  ;;  %v579_v1 = vld [vmem:[%s4901_s7] sm:$0xff] }
 0x3ab   : > { %v4502_v8 = vpop.eup %3703  ;;  %1422 = vadd.xlane.f32.xlu1 %v1421_v24  ;;  %1565 = vmatpush1.xpose.msra.mxu0 %v1514_v32 }
 0x3ac   : > { %v4504_v3 = vpop.eup %3705 }
 0x3ad   : > { %v3708_v59 = vpop.eup %3707  ;;  %v1384_v26 = vpop.xlane.xlu0 %1383  ;;  %v1424_v39 = vadd.f32 %v4504_v3, %v4502_v8 }
 0x3ae   : > { %v4510_v55 = vpop.eup %3709  ;;  %3721 = vrcp.f32 %v1384_v26  ;;  %v1513_v11 = vmul.f32 %v3708_v59, %v4304_v23  ;;  %v1512_v57 = vmul.f32 %v3708_v59, %v4298_v56  ;;  %v1369_v15 = vpop.xlane.xlu1 %1368 }
 0x3af   : > { %v3712_v28 = vpop.eup %3711  ;;  %1425 = vadd.xlane.f32.xlu0 %v1424_v39  ;;  %1416 = vadd.xlane.f32.xlu1 %v1415_v43  ;;  %3723 = vrcp.f32 %v1381_v45  ;;  %v1418_v10 = vadd.f32 %v4510_v55, %v4493_v51 }
 0x3b0   : > { %1566 = vmatprep.subr.mxu0 %v1513_v11  ;;  %v1511_v36 = vmul.f32 %v3712_v28, %v4320_v5  ;;  %v4515_v38 = vpop.eup %3713  ;;  %v1510_v52 = vmul.f32 %v3712_v28, %v4313_v61 }
 0x3b1   : > { %1567 = vmatpush1.xpose.msra.mxu0 %v1512_v57  ;;  %v1378_v40 = vpop.xlane.xlu0 %1377  ;;  %v4520_v49 = vpop.eup %3715 }
 0x3b2   : > { %1568 = vmatprep.subr.mxu0 %v1511_v36  ;;  %3725 = vrcp.f32 %v1378_v40  ;;  %v1412_v5 = vadd.f32 %v4520_v49, %v4515_v38 }
 0x3b3   : > { %v3718_v56 = vpop.eup %3717  ;;  %1419 = vadd.xlane.f32.xlu0 %v1418_v10  ;;  %3727 = vrcp.f32 %v1375_v54 }
 0x3b4   : > { %v1509_v23 = vmul.f32 %v3718_v56, %v4332_v9  ;;  %v1508_v4 = vmul.f32 %v3718_v56, %v4326_v17 }
 0x3b5   : > { %1569 = vmatpush1.xpose.msra.mxu0 %v1510_v52  ;;  %v1372_v21 = vpop.xlane.xlu0 %1371 }
 0x3b6   : > { %1570 = vmatprep.subr.mxu0 %v1509_v23  ;;  %3729 = vrcp.f32 %v1372_v21 }
 0x3b7   : > { %v3720_v42 = vpop.eup %3719  ;;  %1413 = vadd.xlane.f32.xlu0 %v1412_v5  ;;  %3731 = vrcp.f32 %v1369_v15 }
 0x3b8   : > { %v1507_v61 = vmul.f32 %v3720_v42, %v4346_v63  ;;  %v1506_v44 = vmul.f32 %v3720_v42, %v4338_v13 }
 0x3b9   : > { %1571 = vmatpush1.xpose.msra.mxu0 %v1508_v4  ;;  %v1366_v24 = vpop.xlane.xlu0 %1365 }
 0x3ba   : > { %1572 = vmatprep.subr.mxu0 %v1507_v61  ;;  %3733 = vrcp.f32 %v1366_v24  ;;  %v4990_v61 = vld [vmem:[#allocation19_spill] sm:$0xff] }
 0x3bb   : > { %v3722_v37 = vpop.eup %3721 }
 0x3bc   : > { %v1505_v9 = vmul.f32 %v3722_v37, %v4350_v20  ;;  %v3724_v35 = vpop.eup %3723  ;;  %v1504_v17 = vmul.f32 %v3722_v37, %v4348_v31 }
 0x3bd   : > { %1573 = vmatpush1.xpose.msra.mxu0 %v1506_v44  ;;  %v1503_v63 = vmul.f32 %v3724_v35, %v4310_v27  ;;  %v1502_v20 = vmul.f32 %v3724_v35, %v4308_v14 }
 0x3be   : > { %1574 = vmatprep.subr.mxu0 %v1505_v9  ;;  %v4992_v9 = vld [vmem:[#allocation16_spill] sm:$0xff] }
 0x3bf   : > { %v3726_v13 = vpop.eup %3725 }
 0x3c0   : > { %582 = vperm.xlu1 %3574, %v579_v1   ;;  %v1501_v32 = vmul.f32 %v3726_v13, %v4366_v53  ;;  %v3728_v59 = vpop.eup %3727  ;;  %v1500_v31 = vmul.f32 %v3726_v13, %v4359_v60 }
 0x3c1   : > { %1575 = vmatpush1.xpose.msra.mxu0 %v1504_v17  ;;  %v1499_v45 = vmul.f32 %v3728_v59, %v4336_v50  ;;  %v1498_v43 = vmul.f32 %v3728_v59, %v4334_v19  ;;  %v4997_v59 = vld [vmem:[#allocation15_spill] sm:$0xff] }
 0x3c2   : > { %1576 = vmatprep.subr.mxu0 %v1503_v63  ;;  %v4995_v63 = vld [vmem:[#allocation22_spill] sm:$0xff] }
 0x3c3   : > { %v3730_v26 = vpop.eup %3729 }
 0x3c4   : > { %v1497_v14 = vmul.f32 %v3730_v26, %v4374_v30  ;;  %v3732_v11 = vpop.eup %3731  ;;  %v1496_v57 = vmul.f32 %v3730_v26, %v4369_v16  ;;  %v4998_v26 = vld [vmem:[#allocation14_spill] sm:$0xff] }
 0x3c5   : > { %1577 = vmatpush1.xpose.msra.mxu0 %v1502_v20  ;;  %v1456_v39 = vpop.xlane.xlu0 %1455  ;;  %v1495_v50 = vmul.f32 %v3732_v11, %v4357_v46  ;;  %v1494_v36 = vmul.f32 %v3732_v11, %v4354_v58  ;;  %v4996_v20 = vld [vmem:[#allocation21_spill] sm:$0xff]  ;;  %v5000_v11 = vld [vmem:[#allocation23_spill] sm:$0xff] }
 0x3c6   : > { %1578 = vmatprep.subr.mxu0 %v1501_v32 }
 0x3c7   : > { %v3734_v60 = vpop.eup %3733 }
 0x3c8   : > { %v1493_v19 = vmul.f32 %v3734_v60, %v4384_v0  ;;  %v1492_v30 = vmul.f32 %v3734_v60, %v4379_v7  ;;  %v5002_v60 = vld [vmem:[#allocation25_spill] sm:$0xff] }
 0x3c9   : > { %1579 = vmatpush1.xpose.msra.mxu0 %v1500_v31  ;;  %v1459_v27 = vpop.xlane.xlu1 %1458  ;;  %v1450_v28 = vpop.xlane.xlu0 %1449 }
 0x3ca   : > { %1580 = vmatprep.subr.mxu0 %v1499_v45  ;;  %3735 = vrcp.f32 %v1459_v27  ;;  %v4999_v27 = vld [vmem:[#allocation24_spill] sm:$0xff] }
 0x3cb   : > { %3737 = vrcp.f32 %v1456_v39 }
 0x3cd   : > { %1581 = vmatpush1.xpose.msra.mxu0 %v1498_v43  ;;  %v1453_v53 = vpop.xlane.xlu1 %1452  ;;  %v1444_v52 = vpop.xlane.xlu0 %1443 }
 0x3ce   : > { %1582 = vmatprep.subr.mxu0 %v1497_v14  ;;  %3739 = vrcp.f32 %v1453_v53 }
 0x3cf   : > { %3741 = vrcp.f32 %v1450_v28 }
 0x3d1   : > { %1583 = vmatpush1.xpose.msra.mxu0 %v1496_v57  ;;  %v1447_v40 = vpop.xlane.xlu1 %1446  ;;  %v1438_v4 = vpop.xlane.xlu0 %1437  ;;  %v5001_v57 = vld [vmem:[#allocation26_spill] sm:$0xff] }
 0x3d2   : > { %1584 = vmatprep.subr.mxu0 %v1495_v50  ;;  %3743 = vrcp.f32 %v1447_v40  ;;  %v654_v40 = vpop.f32.mrf.mxu0 }
 0x3d3   : > { %3745 = vrcp.f32 %v1444_v52 }
 0x3d5   : > { %1585 = vmatpush1.xpose.msra.mxu0 %v1494_v36  ;;  %v1441_v0 = vpop.xlane.xlu1 %1440 }
 0x3d6   : > { %1586 = vmatprep.subr.mxu0 %v1493_v19  ;;  %3747 = vrcp.f32 %v1441_v0 }
 0x3d7   : > { %v3736_v10 = vpop.eup %3735  ;;  %3749 = vrcp.f32 %v1438_v4 }
 0x3d8   : > { %v3738_v16 = vpop.eup %3737  ;;  %v1555_v46 = vmul.f32 %v3736_v10, %v4418_v29  ;;  %v1554_v56 = vmul.f32 %v3736_v10, %v4416_v2 }
 0x3d9   : > { %1587 = vmatpush1.xpose.msra.mxu0 %v1492_v30  ;;  %v1553_v58 = vmul.f32 %v3738_v16, %v4406_v18  ;;  %v1552_v54 = vmul.f32 %v3738_v16, %v4404_v33  ;;  %v1435_v18 = vpop.xlane.xlu1 %1434  ;;  %v4991_v33 = vld [vmem:[#allocation17_spill] sm:$0xff]  ;;  %v656_v16 = vpop.f32.mrf.mxu0 }
 0x3da   : > { %1588 = vmatprep.subr.mxu0 %v1555_v46  ;;  %3751 = vrcp.f32 %v1435_v18 }
 0x3db   : > { %v3740_v23 = vpop.eup %3739 }
 0x3dc   : > { %v1551_v7 = vmul.f32 %v3740_v23, %v4426_v48  ;;  %v3742_v5 = vpop.eup %3741  ;;  %v1550_v29 = vmul.f32 %v3740_v23, %v4420_v47  ;;  %v1432_v48 = vpop.xlane.xlu0 %1431  ;;  %v4993_v47 = vld [vmem:[#allocation18_spill] sm:$0xff] }
 0x3dd   : > { %1589 = vmatpush2.xpose.msra.mxu0 %v1554_v56  ;;  %v1549_v2 = vmul.f32 %v3742_v5, %v4412_v25  ;;  %v1548_v21 = vmul.f32 %v3742_v5, %v4990_v61  ;;  %3753 = vrcp.f32 %v1432_v48  ;;  %v4994_v25 = vld [vmem:[#allocation20_spill] sm:$0xff]  ;;  %v3771_v48 = vld [vmem:[%s3973_s22] sm:$0xff] }
 0x3de   : > { %1590 = vmatprep.subr.mxu0 %v1553_v58 }
 0x3df   : > { %v3744_v42 = vpop.eup %3743 }
 0x3e0   : > { %v1547_v44 = vmul.f32 %v3744_v42, %v4991_v33  ;;  %v3746_v37 = vpop.eup %3745  ;;  %v1546_v35 = vmul.f32 %v3744_v42, %v4992_v9  ;;  %v5003_v33 = vmov 0.0  }
 0x3e1   : > { %1591 = vmatpush2.xpose.msra.mxu0 %v1552_v54  ;;  %v1545_v15 = vmul.f32 %v3746_v37, %v4993_v47  ;;  %v1544_v1 = vmul.f32 %v3746_v37, %v4994_v25 }
 0x3e2   : > { %1592 = vmatprep.subr.mxu0 %v1551_v7 }
 0x3e3   : > { %v3748_v17 = vpop.eup %3747 }
 0x3e4   : > { %v1543_v13 = vmul.f32 %v3748_v17, %v4995_v63  ;;  %v3750_v24 = vpop.eup %3749  ;;  %v1542_v32 = vmul.f32 %v3748_v17, %v4996_v20 }
 0x3e5   : > { %1593 = vmatpush2.xpose.msra.mxu0 %v1550_v29  ;;  %v1541_v31 = vmul.f32 %v3750_v24, %v4997_v59  ;;  %v1540_v39 = vmul.f32 %v3750_v24, %v4998_v26 }
 0x3e6   : > { %1594 = vmatprep.subr.mxu0 %v1549_v2 }
 0x3e7   : > { %v3752_v45 = vpop.eup %3751 }
 0x3e8   : > { %v1539_v43 = vmul.f32 %v3752_v45, %v4999_v27  ;;  %v1538_v53 = vmul.f32 %v3752_v45, %v5000_v11  ;;  %v2484_v45 = vld [vmem:[%s4903_s9] sm:$0xff] }
 0x3e9   : > { %1595 = vmatpush2.xpose.msra.mxu0 %v1548_v21 }
 0x3ea   : > { %1596 = vmatprep.subr.mxu0 %v1547_v44  ;;  %v3754_v14 = vpop.eup %3753 }
 0x3eb   : > { %v1537_v50 = vmul.f32 %v3754_v14, %v5001_v57  ;;  %v1536_v28 = vmul.f32 %v3754_v14, %v5002_v60 }
 0x3ed   : > { %1597 = vmatpush2.xpose.msra.mxu0 %v1546_v35 }
 0x3ee   : > { %1598 = vmatprep.subr.mxu0 %v1545_v15 }
 0x3f1   : > { %1599 = vmatpush2.xpose.msra.mxu0 %v1544_v1 }
 0x3f2   : > { %1600 = vmatprep.subr.mxu0 %v1543_v13 }
 0x3f5   : > { %1601 = vmatpush2.xpose.msra.mxu0 %v1542_v32 }
 0x3f6   : > { %1602 = vmatprep.subr.mxu0 %v1541_v31  ;;  %v1683_v31 = vld [vmem:[%s4902_s8] sm:$0xff] }
 0x3f9   : > { %1603 = vmatpush2.xpose.msra.mxu0 %v1540_v39 }
 0x3fa   : > { %1604 = vmatprep.subr.mxu0 %v1539_v43 }
 0x3fd   : > { %1605 = vmatpush2.xpose.msra.mxu0 %v1538_v53 }
 0x3fe   : > { %1606 = vmatprep.subr.mxu0 %v1537_v50 }
 0x401   : > { %1607 = vmatpush2.xpose.msra.mxu0 %v1536_v28 }
 0x430   : > { %v1429_v36 = vpop.xlane.xlu1 %1428 }
 0x431   : > { %3755 = vrcp.f32 %v1429_v36 }
 0x434   : > { %v1423_v19 = vpop.xlane.xlu1 %1422 }
 0x435   : > { %3757 = vrcp.f32 %v1423_v19  ;;  %v3458_v19 = vld [vmem:[%s4902_s8 + $0x8] sm:$0xff] }
 0x438   : > { %v1426_v30 = vpop.xlane.xlu0 %1425  ;;  %v1417_v10 = vpop.xlane.xlu1 %1416 }
 0x439   : > { %3759 = vrcp.f32 %v1426_v30 }
 0x43c   : > { %v1420_v52 = vpop.xlane.xlu0 %1419  ;;  %v583_v46 = vpop.permute.xlu1 %582 }
 0x43d   : > { %3761 = vrcp.f32 %v1420_v52  ;;  %v657_v56 = vadd.f32 %v656_v16, %v583_v46 }
 0x43e   : > { %v3756_v58 = vpop.eup %3755  ;;  %3763 = vrcp.f32 %v1417_v10 }
 0x43f   : > { %v1535_v23 = vmul.f32 %v3756_v58, %v4485_v22  ;;  %v1534_v0 = vmul.f32 %v3756_v58, %v4483_v12  ;;  %1620 = vmatprep.mubr.f32.mxu0 %v657_v56 }
 0x440   : > { %v1414_v54 = vpop.xlane.xlu0 %1413 }
 0x441   : > { %1608 = vmatprep.subr.mxu0 %v1535_v23  ;;  %3765 = vrcp.f32 %v1414_v54 }
 0x442   : > { %1609 = vmatpush2.xpose.msra.mxu0 %v1534_v0  ;;  %v3758_v7 = vpop.eup %3757 }
 0x443   : > { %v1531_v2 = vmul.f32 %v3758_v7, %v4490_v34  ;;  %v1530_v12 = vmul.f32 %v3758_v7, %v4480_v41  ;;  %v3467_v7 = vld [vmem:[%s4902_s8 + $0x18] sm:$0xff] }
 0x446   : > { %v3760_v5 = vpop.eup %3759 }
 0x447   : > { %v1533_v4 = vmul.f32 %v3760_v5, %v4504_v3  ;;  %v1532_v29 = vmul.f32 %v3760_v5, %v4502_v8 }
 0x449   : > { %1610 = vmatprep.subr.mxu0 %v1533_v4 }
 0x44a   : > { %v3762_v42 = vpop.eup %3761  ;;  %1611 = vmatpush2.xpose.msra.mxu0 %v1532_v29 }
 0x44b   : > { %1612 = vmatprep.subr.mxu0 %v1531_v2  ;;  %v1529_v22 = vmul.f32 %v3762_v42, %v4510_v55  ;;  %v3764_v18 = vpop.eup %3763  ;;  %v1528_v61 = vmul.f32 %v3762_v42, %v4493_v51  ;;  %v655_v55 = vadd.f32 %v654_v40, %v583_v46  ;;  %v1628_v51 = vstv %s1627_s29  ;;  %v3463_v46 = vld [vmem:[%s4902_s8 + $0x10] sm:$0xff]  ;;  %v3471_v2 = vld [vmem:[%s4902_s8 + $0x20] sm:$0xff] }
 0x44c   : > { %v1527_v21 = vmul.f32 %v3764_v18, %v4500_v6  ;;  %v1526_v34 = vmul.f32 %v3764_v18, %v4495_v62 }
 0x44e   : > { %1613 = vmatpush2.xpose.msra.mxu0 %v1530_v12  ;;  %v3766_v3 = vpop.eup %3765 }
 0x44f   : > { %1614 = vmatprep.subr.mxu0 %v1529_v22  ;;  %v1525_v8 = vmul.f32 %v3766_v3, %v4520_v49  ;;  %v1524_v41 = vmul.f32 %v3766_v3, %v4515_v38  ;;  %v3772_v49 = vld [vmem:[%s3973_s22 + $0x8] sm:$0xff]  ;;  %v1633_v38 = vlaneseq  ;;  %s3838_s22 = smov 126  }
 0x451   : > { %v4588_v47 = vand.u32 127, %v1633_v38 }
 0x452   : > { %1615 = vmatpush2.xpose.msra.mxu0 %v1528_v61 }
 0x453   : > { %1616 = vmatprep.subr.mxu0 %v1527_v21  ;;  %v4591_v15 = vadd.s32 128, %v4588_v47  ;;  %v1640_v25 = vand.u32 15, %v4588_v47  ;;  %v3473_v21 = vld [vmem:[%s4902_s8 + $0x28] sm:$0xff] }
 0x455   : > { %v1647_v17 = vand.u32 15, %v4591_v15  ;;  %vm4606_vm3 = vcmp.gt.s32.totalorder %v1640_v25, 0  ;;  %vm4662_vm7 = vcmp.lt.s32.totalorder %v1640_v25, 15  ;;  %v3483_v15 = vld [vmem:[%s4902_s8 + $0x40] sm:$0xff] }
 0x456   : > { %1617 = vmatpush2.xpose.msra.mxu0 %v1526_v34 }
 0x457   : > { %1618 = vmatprep.subr.mxu0 %v1525_v8  ;;  %vm4598_vm2 = vcmp.gt.s32.totalorder %v1647_v17, 0  ;;  %vm4655_vm6 = vcmp.lt.s32.totalorder %v1647_v17, 15 }
 0x45a   : > { %1619 = vmatpush2.xpose.msra.mxu0 %v1524_v41  ;;  %v3477_v41 = vld [vmem:[%s4902_s8 + $0x30] sm:$0xff] }
 0x45d   : > { %1621 = vmatmul.mubr.f32.vlgmr.msra.gmra.mxu0 %v655_v55 }
 0x45e   : > { %1840 = vmatprep.mubr.f32.mxu0 %v5003_v33 }
 0x51d   : > { %v1622_v6 = vpop.f32.mrf.mxu0 }
 0x51e   : > { %v1629_v44 = vmul.f32 %v1628_v51, %v1622_v6 }
 0x51f   : > { %v1624_v37 = vpop.f32.mrf.mxu0 }
 0x520   : > { %v4579_v9 = vadd.f32 %v3771_v48, %v1629_v44  ;;  %v1630_v62 = vmul.f32 %v1628_v51, %v1624_v37  ;;  %v3481_v48 = vld [vmem:[%s4902_s8 + $0x38] sm:$0xff] }
 0x522   : > { %v4582_v35 = vadd.f32 %v3772_v49, %v1630_v62  ;;  %1666 = vrot.lane.b32.xlu0 %v4579_v9, %s3837_s30 }
 0x524   : > { %1668 = vrot.lane.b32.xlu1 %v4582_v35, %s3837_s30 }
 0x594   : > { %v1667_v1 = vpop.permute.xlu0 %1666 }
 0x595   : > { %v1675_v63 = vsel %vm1670_vm1, 0.0, %v1667_v1 }
 0x596   : > { %1851 = vrot.lane.b32.xlu0 %v1675_v63, %s3838_s22  ;;  %1688 = vrot.lane.b32.xlu1 %v1675_v63, %s3839_s16  ;;  %v1669_v24 = vpop.permute.xlu1 %1668 }
 0x597   : > { %v1671_v32 = vsel %vm1670_vm1, %v1667_v1, %v1669_v24  ;;  %v1676_v59 = vsel %vm1670_vm1, %v1669_v24, 0.0 }
 0x598   : > { %3460 = vmatprep.subr.msk.mxu0 %vm4598_vm2, %v1671_v32 }
 0x599   : > { %3461 = vmatpush1.msk.msra.mxu0 %vm4606_vm3, %v1675_v63 }
 0x59a   : > { %2035 = vrot.lane.b32.xlu0 %v1675_v63, %s3840_s17  ;;  %1942 = vrot.lane.b32.xlu1 %v1675_v63, %s4937_s18 }
 0x59b   : > { %3462 = vmatmul.mubr.msk.f32.vlgmr.msra.gmra.mxu0 %vm422_vm0, %v1683_v31 }
 0x59c   : > { %2024 = vmatprep.mubr.f32.mxu0 %v5003_v33 }
 0x59e   : > { %2213 = vrot.lane.b32.xlu0 %v1675_v63, %s3842_s19  ;;  %2122 = vrot.lane.b32.xlu1 %v1675_v63, %s3843_s20 }
 0x5a2   : > { %2306 = vrot.lane.b32.xlu1 %v1675_v63, %s4941_s21  ;;  %1692 = vrot.lane.b32.xlu0 %v1676_v59, %s3839_s16 }
 0x5a6   : > { %1853 = vrot.lane.b32.xlu0 %v1671_v32, %s3838_s22  ;;  %1690 = vrot.lane.b32.xlu1 %v1671_v32, %s3839_s16 }
 0x5aa   : > { %1946 = vrot.lane.b32.xlu0 %v1676_v59, %s4937_s18  ;;  %1855 = vrot.lane.b32.xlu1 %v1676_v59, %s3838_s22 }
 0x5ae   : > { %2037 = vrot.lane.b32.xlu0 %v1671_v32, %s3840_s17  ;;  %1944 = vrot.lane.b32.xlu1 %v1671_v32, %s4937_s18 }
 0x5b2   : > { %2126 = vrot.lane.b32.xlu0 %v1676_v59, %s3843_s20  ;;  %2039 = vrot.lane.b32.xlu1 %v1676_v59, %s3840_s17 }
 0x5b6   : > { %2215 = vrot.lane.b32.xlu0 %v1671_v32, %s3842_s19  ;;  %2124 = vrot.lane.b32.xlu1 %v1671_v32, %s3843_s20 }
 0x5ba   : > { %2310 = vrot.lane.b32.xlu0 %v1676_v59, %s4941_s21  ;;  %2217 = vrot.lane.b32.xlu1 %v1676_v59, %s3842_s19 }
 0x5be   : > { %2395 = vrot.lane.b32.xlu0 %v1671_v32, %s4939_s27  ;;  %2308 = vrot.lane.b32.xlu1 %v1671_v32, %s4941_s21 }
 0x5c2   : > { %2393 = vrot.lane.b32.xlu0 %v1675_v63, %s4939_s27  ;;  %2397 = vrot.lane.b32.xlu1 %v1676_v59, %s4939_s27  ;;  %s5012_s27 = smov 112  }
 0x5c6   : > { %2487 = vperm.xlu1 %3574, %v2484_v45  }
 0x608   : > { %v1852_v26 = vpop.permute.xlu0 %1851  ;;  %v1689_v39 = vpop.permute.xlu1 %1688 }
 0x60c   : > { %v2036_v27 = vpop.permute.xlu0 %2035  ;;  %v1943_v43 = vpop.permute.xlu1 %1942 }
 0x610   : > { %v2214_v14 = vpop.permute.xlu0 %2213  ;;  %v2123_v11 = vpop.permute.xlu1 %2122 }
 0x614   : > { %v1693_v53 = vpop.permute.xlu0 %1692  ;;  %v4646_v57 = vpop.permute.xlu1 %2306 }
 0x618   : > { %v1854_v50 = vpop.permute.xlu0 %1853  ;;  %v1691_v60 = vpop.permute.xlu1 %1690 }
 0x619   : > { %v1695_v28 = vsel %vm1694_vm4, %v1689_v39, %v1691_v60  ;;  %v1696_v36 = vsel %vm1694_vm4, %v1691_v60, %v1693_v53  ;;  %v1858_v56 = vsel %vm1857_vm5, %v1852_v26, %v1854_v50 }
 0x61a   : > { %1732 = vmatprep.subr.mxu1 %v1696_v36 }
 0x61b   : > { %1733 = vmatpush1.msra.mxu1 %v1695_v28 }
 0x61c   : > { %v1947_v30 = vpop.permute.xlu0 %1946  ;;  %v1856_v10 = vpop.permute.xlu1 %1855  ;;  %3459 = vmatmul.mubr.msk.f32.vlgmr.msra.gmra.mxu1 %vm422_vm0, %v3458_v19 }
 0x61d   : > { %v1859_v52 = vsel %vm1857_vm5, %v1854_v50, %v1856_v10  ;;  %1933 = vmatprep.mubr.f32.mxu1 %v5003_v33 }
 0x61e   : > { %3464 = vmatprep.subr.msk.mxu1 %vm4655_vm6, %v1859_v52 }
 0x61f   : > { %3465 = vmatpush1.msk.msra.mxu1 %vm4662_vm7, %v1858_v56 }
 0x620   : > { %v2038_v58 = vpop.permute.xlu0 %2037  ;;  %v1945_v23 = vpop.permute.xlu1 %1944  ;;  %3466 = vmatmul.mubr.msk.f32.vlgmr.msra.gmra.mxu1 %vm422_vm0, %v3463_v46 }
 0x621   : > { %v1949_v0 = vsel %vm1948_vm8, %v1943_v43, %v1945_v23  ;;  %v1950_v54 = vsel %vm1948_vm8, %v1945_v23, %v1947_v30  ;;  %2113 = vmatprep.mubr.f32.mxu1 %v5003_v33  ;;  %v2042_v42 = vsel %vm2041_vm9, %v2036_v27, %v2038_v58 }
 0x622   : > { %3468 = vmatprep.subr.msk.mxu0 %vm4598_vm2, %v1950_v54 }
 0x623   : > { %3469 = vmatpush1.msk.msra.mxu0 %vm4606_vm3, %v1949_v0 }
 0x624   : > { %v2127_v5 = vpop.permute.xlu0 %2126  ;;  %v2040_v4 = vpop.permute.xlu1 %2039  ;;  %3470 = vmatmul.mubr.msk.f32.vlgmr.msra.gmra.mxu0 %vm422_vm0, %v3467_v7 }
 0x625   : > { %v2043_v29 = vsel %vm2041_vm9, %v2038_v58, %v2040_v4  ;;  %2204 = vmatprep.mubr.f32.mxu0 %v5003_v33 }
 0x626   : > { %2079 = vmatprep.subr.mxu1 %v2043_v29 }
 0x627   : > { %2080 = vmatpush1.msra.mxu1 %v2042_v42 }
 0x628   : > { %v2216_v12 = vpop.permute.xlu0 %2215  ;;  %v2125_v22 = vpop.permute.xlu1 %2124  ;;  %3472 = vmatmul.mubr.msk.f32.vlgmr.msra.gmra.mxu1 %vm422_vm0, %v3471_v2 }
 0x629   : > { %v2129_v18 = vsel %vm2128_vm10, %v2123_v11, %v2125_v22  ;;  %v2130_v61 = vsel %vm2128_vm10, %v2125_v22, %v2127_v5  ;;  %2295 = vmatprep.mubr.f32.mxu1 %v5003_v33  ;;  %v2220_v55 = vsel %vm2219_vm11, %v2214_v14, %v2216_v12 }
 0x62a   : > { %3474 = vmatprep.subr.msk.mxu0 %vm4655_vm6, %v2130_v61 }
 0x62b   : > { %3475 = vmatpush1.msk.msra.mxu0 %vm4662_vm7, %v2129_v18 }
 0x62c   : > { %v2311_v3 = vpop.permute.xlu0 %2310  ;;  %v2218_v34 = vpop.permute.xlu1 %2217  ;;  %3476 = vmatmul.mubr.msk.f32.vlgmr.msra.gmra.mxu0 %vm422_vm0, %v3473_v21 }
 0x62d   : > { %v2221_v8 = vsel %vm2219_vm11, %v2216_v12, %v2218_v34  ;;  %2384 = vmatprep.mubr.f32.mxu0 %v5003_v33 }
 0x62e   : > { %3478 = vmatprep.subr.msk.mxu1 %vm4598_vm2, %v2221_v8 }
 0x62f   : > { %3479 = vmatpush1.msk.msra.mxu1 %vm4606_vm3, %v2220_v55 }
 0x630   : > { %v2396_v51 = vpop.permute.xlu0 %2395  ;;  %v2309_v6 = vpop.permute.xlu1 %2308  ;;  %3480 = vmatmul.mubr.msk.f32.vlgmr.msra.gmra.mxu1 %vm422_vm0, %v3477_v41 }
 0x631   : > { %v2313_v44 = vsel %vm2312_vm12, %v4646_v57, %v2309_v6  ;;  %v2314_v37 = vsel %vm2312_vm12, %v2309_v6, %v2311_v3  ;;  %2475 = vmatprep.mubr.f32.mxu1 %v5003_v33 }
 0x632   : > { %2350 = vmatprep.subr.mxu0 %v2314_v37 }
 0x633   : > { %2351 = vmatpush1.msra.mxu0 %v2313_v44 }
 0x634   : > { %v2394_v62 = vpop.permute.xlu0 %2393  ;;  %v2398_v49 = vpop.permute.xlu1 %2397  ;;  %3482 = vmatmul.mubr.msk.f32.vlgmr.msra.gmra.mxu0 %vm422_vm0, %v3481_v48 }
 0x635   : > { %v2400_v38 = vsel %vm2399_vm13, %v2394_v62, %v2396_v51  ;;  %v2401_v47 = vsel %vm2399_vm13, %v2396_v51, %v2398_v49  ;;  %2607 = vmatprep.mubr.f32.mxu0 %v5003_v33 }
 0x636   : > { %3484 = vmatprep.subr.msk.mxu1 %vm4655_vm6, %v2401_v47 }
 0x637   : > { %3485 = vmatpush1.msk.msra.mxu1 %vm4662_vm7, %v2400_v38 }
 0x638   : > { %3486 = vmatmul.mubr.msk.f32.vlgmr.msra.gmra.mxu1 %vm422_vm0, %v3483_v15 }
 0x639   : > { %2681 = vmatprep.mubr.f32.mxu1 %v5003_v33 }
 0x641   : > { %v2488_v29 = vpop.permute.xlu1 %2487 }
 0x65b   : > { %v1842_v25 = vpop.f32.mrf.mxu0 }
 0x65d   : > { %v1844_v24 = vpop.f32.mrf.mxu0 }
 0x6dc   : > { %v1768_v17 = vpop.f32.mrf.mxu1 }
 0x6dd   : > { %v1843_v63 = vadd.f32 %v1842_v25, %v1768_v17  ;;  %v2525_v25 = vld [vmem:[%s4904_s10] sm:$0xff] }
 0x6de   : > { %v1770_v1 = vpop.f32.mrf.mxu1 }
 0x6df   : > { %v1845_v59 = vadd.f32 %v1844_v24, %v1770_v1  ;;  %v3314_v1 = vld [vmem:[%s4905_s11] sm:$0xff] }
 0x6e0   : > { %v1935_v32 = vpop.f32.mrf.mxu1 }
 0x6e1   : > { %v1940_v31 = vadd.f32 %v1935_v32, %v1843_v63 }
 0x6e2   : > { %v1937_v45 = vpop.f32.mrf.mxu1 }
 0x6e3   : > { %v1941_v39 = vadd.f32 %v1937_v45, %v1845_v59  ;;  %v3487_v45 = vld [vmem:[%s4904_s10 + $0x8] sm:$0xff] }
 0x6e4   : > { %v2026_v26 = vpop.f32.mrf.mxu0 }
 0x6e5   : > { %v2031_v27 = vadd.f32 %v2026_v26, %v1940_v31 }
 0x6e6   : > { %v2028_v43 = vpop.f32.mrf.mxu0 }
 0x6e7   : > { %v2032_v11 = vadd.f32 %v2028_v43, %v1941_v39 }
 0x6e8   : > { %v2115_v14 = vpop.f32.mrf.mxu1 }
 0x6e9   : > { %v2120_v53 = vadd.f32 %v2115_v14, %v2031_v27 }
 0x6ea   : > { %v2117_v57 = vpop.f32.mrf.mxu1 }
 0x6eb   : > { %v2121_v60 = vadd.f32 %v2117_v57, %v2032_v11  ;;  %v3492_v11 = vld [vmem:[%s4904_s10 + $0x10] sm:$0xff] }
 0x6ec   : > { %v2206_v50 = vpop.f32.mrf.mxu0 }
 0x6ed   : > { %v2211_v28 = vadd.f32 %v2206_v50, %v2120_v53 }
 0x6ee   : > { %v2208_v36 = vpop.f32.mrf.mxu0 }
 0x6ef   : > { %v2212_v30 = vadd.f32 %v2208_v36, %v2121_v60  ;;  %v3496_v36 = vld [vmem:[%s4904_s10 + $0x18] sm:$0xff] }
 0x6f0   : > { %v2297_v19 = vpop.f32.mrf.mxu1 }
 0x6f1   : > { %v2302_v10 = vadd.f32 %v2297_v19, %v2211_v28 }
 0x6f2   : > { %v2299_v52 = vpop.f32.mrf.mxu1 }
 0x6f3   : > { %v2303_v58 = vadd.f32 %v2299_v52, %v2212_v30 }
 0x6f4   : > { %v2386_v46 = vpop.f32.mrf.mxu0 }
 0x6f5   : > { %v2391_v23 = vadd.f32 %v2386_v46, %v2302_v10 }
 0x6f6   : > { %v2388_v56 = vpop.f32.mrf.mxu0 }
 0x6f7   : > { %v2392_v54 = vadd.f32 %v2388_v56, %v2303_v58  ;;  %v3500_v56 = vld [vmem:[%s4904_s10 + $0x20] sm:$0xff] }
 0x6f8   : > { %v2477_v0 = vpop.f32.mrf.mxu1 }
 0x6f9   : > { %v2482_v7 = vadd.f32 %v2477_v0, %v2391_v23 }
 0x6fa   : > { %v2479_v5 = vpop.f32.mrf.mxu1 }
 0x6fb   : > { %v2483_v4 = vadd.f32 %v2479_v5, %v2392_v54  ;;  %v2490_v2 = vadd.f32 %v2488_v29, %v2482_v7  ;;  %v3502_v5 = vld [vmem:[%s4904_s10 + $0x28] sm:$0xff] }
 0x6fd   : > { %v2491_v42 = vadd.f32 %v2488_v29, %v2483_v4 }
 0x6ff   : > { %v2492_v12 = vadd.f32 %v2491_v42, %v2490_v2 }
 0x701   : > { %2493 = vadd.xlane.f32.xlu0 %v2492_v12 }
 0x78a   : > { %v2494_v22 = vpop.xlane.xlu0 %2493 }
 0x78b   : > { %v2496_v18 = vmul.f32 0.00390625, %v2494_v22  ;;  %v3506_v22 = vld [vmem:[%s4904_s10 + $0x30] sm:$0xff] }
 0x78d   : > { %v2497_v61 = vsub.f32 %v2490_v2, %v2496_v18  ;;  %v2498_v21 = vsub.f32 %v2491_v42, %v2496_v18 }
 0x78f   : > { %v2499_v3 = vmul.f32 %v2497_v61, %v2497_v61  ;;  %v2500_v34 = vmul.f32 %v2498_v21, %v2498_v21 }
 0x791   : > { %v2501_v8 = vadd.f32 %v2500_v34, %v2499_v3 }
 0x793   : > { %2502 = vadd.xlane.f32.xlu1 %v2501_v8  ;;  %v3510_v8 = vld [vmem:[%s4904_s10 + $0x38] sm:$0xff] }
 0x81c   : > { %v2503_v41 = vpop.xlane.xlu1 %2502 }
 0x81d   : > { %v2504_v55 = vmul.f32 0.00390625, %v2503_v41 }
 0x81f   : > { %v2505_v51 = vadd.f32 1e-05, %v2504_v55 }
 0x821   : > { %3767 = vrsqrt.f32 %v2505_v51 }
 0x82e   : > { %v3768_v6 = vpop.eup %3767 }
 0x82f   : > { %v2508_v44 = vmul.f32 %v3768_v6, %v2498_v21  ;;  %v2507_v37 = vmul.f32 %v3768_v6, %v2497_v61 }
 0x831   : > { %v2510_v48 = vmax.f32 %v2508_v44, 0.0  ;;  %v2509_v62 = vmax.f32 %v2507_v37, 0.0 }
 0x833   : > { %2515 = vrot.lane.b32.xlu1 %v2510_v48, %s3837_s30  ;;  %2513 = vrot.lane.b32.xlu0 %v2509_v62, %s3837_s30 }
 0x8a5   : > { %v2516_v49 = vpop.permute.xlu1 %2515  ;;  %v2514_v38 = vpop.permute.xlu0 %2513 }
 0x8a6   : > { %v2522_v47 = vsel %vm1670_vm1, %v2516_v49, 0.0  ;;  %v2517_v15 = vsel %vm1670_vm1, %v2514_v38, %v2516_v49  ;;  %v2521_v17 = vsel %vm1670_vm1, 0.0, %v2514_v38 }
 0x8a7   : > { %2534 = vrot.lane.b32.xlu1 %v2522_v47, %s3839_s16  ;;  %2532 = vrot.lane.b32.xlu0 %v2517_v15, %s3839_s16 }
 0x8a8   : > { %3489 = vmatprep.subr.msk.mxu1 %vm4598_vm2, %v2517_v15 }
 0x8a9   : > { %3490 = vmatpush1.msk.msra.mxu1 %vm4606_vm3, %v2521_v17 }
 0x8aa   : > { %3491 = vmatmul.mubr.msk.f32.vlgmr.msra.gmra.mxu1 %vm422_vm0, %v2525_v25 }
 0x8ab   : > { %2690 = vrot.lane.b32.xlu1 %v2517_v15, %s3838_s22  ;;  %2530 = vrot.lane.b32.xlu0 %v2521_v17, %s3839_s16  ;;  %s5014_s16 = smov 94  }
 0x8ac   : > { %2859 = vmatprep.mubr.f32.mxu1 %v5003_v33 }
 0x8af   : > { %2688 = vrot.lane.b32.xlu1 %v2521_v17, %s3838_s22  ;;  %2692 = vrot.lane.b32.xlu0 %v2522_v47, %s3838_s22  ;;  %s5013_s22 = smov 95  }
 0x8b3   : > { %2782 = vrot.lane.b32.xlu1 %v2522_v47, %s5012_s27  ;;  %2780 = vrot.lane.b32.xlu0 %v2517_v15, %s5012_s27 }
 0x8b7   : > { %2872 = vrot.lane.b32.xlu1 %v2517_v15, %s3840_s17  ;;  %2778 = vrot.lane.b32.xlu0 %v2521_v17, %s5012_s27 }
 0x8bb   : > { %2870 = vrot.lane.b32.xlu1 %v2521_v17, %s3840_s17  ;;  %2874 = vrot.lane.b32.xlu0 %v2522_v47, %s3840_s17  ;;  %s3522_s17 = sshll.u32 %s3936_s0, 8  ;;  %s3846_s0 = smov [#allocation3]  }
 0x8bc   : > { %s4859_s18 = scalar_lea.hbm %s4906_s12, %s3522_s17 }
 0x8bf   : > { %2960 = vrot.lane.b32.xlu1 %v2522_v47, %s3843_s20  ;;  %2958 = vrot.lane.b32.xlu0 %v2517_v15, %s3843_s20 }
 0x8c3   : > { %3048 = vrot.lane.b32.xlu1 %v2517_v15, %s3842_s19  ;;  %2956 = vrot.lane.b32.xlu0 %v2521_v17, %s3843_s20 }
 0x8c7   : > { %3046 = vrot.lane.b32.xlu1 %v2521_v17, %s3842_s19  ;;  %3050 = vrot.lane.b32.xlu0 %v2522_v47, %s3842_s19 }
 0x8cb   : > { %3142 = vrot.lane.b32.xlu1 %v2522_v47, %s5013_s22  ;;  %3140 = vrot.lane.b32.xlu0 %v2517_v15, %s5013_s22 }
 0x8cf   : > { %3226 = vrot.lane.b32.xlu1 %v2517_v15, %s5014_s16  ;;  %3138 = vrot.lane.b32.xlu0 %v2521_v17, %s5013_s22  ;;  %s405_s22 = sand.u32 1, %s3825_s24  }
 0x8d0   : > { %s3343_s30 = scalar_lea.sflag [#allocation4], %s405_s22 }
 0x8d3   : > { %3224 = vrot.lane.b32.xlu1 %v2521_v17, %s5014_s16  ;;  %3228 = vrot.lane.b32.xlu0 %v2522_v47, %s5014_s16  ;;  %s3420_s16 = sshll.u32 %s405_s22, 4 }
 0x8d4   : > { %s407_s21 = scalar_lea.vmem [#allocation3], %s3420_s16  ;;  %s3777_s16 = sshll.u32 %s3846_s0, 4  ;;  %s3778_s16 = int_to_ptr.vmem [resolvable:$false] %s3777_s16 }
 0x8d5   : > { %s3357_s19 = sshll.u32 %s407_s21, 4  ;;  %s3779_s1 = scalar_lea.vmem %s3778_s16, 512  ;;  %s3358_s19 = int_to_ptr.vmem [resolvable:$true] %s3357_s19 }
 0x8d6   : > { %s3773_s27 = scalar_lea.vmem %s3358_s19, 256  ;;  %p3780_p0 = scmp.lt.s32.totalorder %s3358_s19, %s3778_s16 }
 0x8d7   : > { %3317 = vperm.xlu0 %3573, %v3314_v1   ;;  %p3774_p11 = scmp.ne.s32.totalorder %s3358_s19, %s3773_s27  ;;  %p3781_p1 = scmp.lt.s32.totalorder %s3779_s1, %s3773_s27 }
 0x8d9   : > { %p3775_p12 = pnand %p3774_p11, %p3953_p5  ;;  %p3782_p2 = por %p3781_p1, %p3780_p0 }
 0x8db   : > { %p3776_p13 = pneg %p3775_p12 }
 0x8dd   : > { %p3783_p3 = pnand %p3782_p2, %p3776_p13 }
 0x919   : > { %v2535_v63 = vpop.permute.xlu1 %2534  ;;  %v2533_v24 = vpop.permute.xlu0 %2532 }
 0x91a   : > { %v2537_v32 = vsel %vm1694_vm4, %v2533_v24, %v2535_v63 }
 0x91b   : > { %2573 = vmatprep.subr.mxu0 %v2537_v32 }
 0x91d   : > { %v2691_v59 = vpop.permute.xlu1 %2690  ;;  %v2531_v31 = vpop.permute.xlu0 %2530 }
 0x91e   : > { %v2536_v26 = vsel %vm1694_vm4, %v2531_v31, %v2533_v24 }
 0x91f   : > { %2574 = vmatpush1.msra.mxu0 %v2536_v26 }
 0x920   : > { %3488 = vmatmul.mubr.msk.f32.vlgmr.msra.gmra.mxu0 %vm422_vm0, %v3487_v45 }
 0x921   : > { %v2689_v39 = vpop.permute.xlu1 %2688  ;;  %v2693_v27 = vpop.permute.xlu0 %2692  ;;  %2769 = vmatprep.mubr.f32.mxu0 %v5003_v33 }
 0x922   : > { %v2694_v43 = vsel %vm1857_vm5, %v2689_v39, %v2691_v59  ;;  %v2695_v14 = vsel %vm1857_vm5, %v2691_v59, %v2693_v27 }
 0x923   : > { %3493 = vmatprep.subr.msk.mxu0 %vm4655_vm6, %v2695_v14 }
 0x924   : > { %3494 = vmatpush1.msk.msra.mxu0 %vm4662_vm7, %v2694_v43 }
 0x925   : > { %v2783_v53 = vpop.permute.xlu1 %2782  ;;  %v2781_v57 = vpop.permute.xlu0 %2780  ;;  %3495 = vmatmul.mubr.msk.f32.vlgmr.msra.gmra.mxu0 %vm422_vm0, %v3492_v11 }
 0x926   : > { %v2785_v50 = vsel %vm1948_vm8, %v2781_v57, %v2783_v53  ;;  %2947 = vmatprep.mubr.f32.mxu0 %v5003_v33 }
 0x927   : > { %3497 = vmatprep.subr.msk.mxu1 %vm4598_vm2, %v2785_v50 }
 0x929   : > { %v2873_v60 = vpop.permute.xlu1 %2872  ;;  %v2779_v28 = vpop.permute.xlu0 %2778 }
 0x92a   : > { %v2784_v19 = vsel %vm1948_vm8, %v2779_v28, %v2781_v57 }
 0x92b   : > { %3498 = vmatpush1.msk.msra.mxu1 %vm4606_vm3, %v2784_v19 }
 0x92c   : > { %3499 = vmatmul.mubr.msk.f32.vlgmr.msra.gmra.mxu1 %vm422_vm0, %v3496_v36 }
 0x92d   : > { %v2871_v30 = vpop.permute.xlu1 %2870  ;;  %v2875_v10 = vpop.permute.xlu0 %2874  ;;  %3037 = vmatprep.mubr.f32.mxu1 %v5003_v33 }
 0x92e   : > { %v2876_v52 = vsel %vm2041_vm9, %v2871_v30, %v2873_v60  ;;  %v2877_v46 = vsel %vm2041_vm9, %v2873_v60, %v2875_v10 }
 0x92f   : > { %2913 = vmatprep.subr.mxu0 %v2877_v46 }
 0x930   : > { %2914 = vmatpush1.msra.mxu0 %v2876_v52 }
 0x931   : > { %v2961_v58 = vpop.permute.xlu1 %2960  ;;  %v2959_v23 = vpop.permute.xlu0 %2958  ;;  %3501 = vmatmul.mubr.msk.f32.vlgmr.msra.gmra.mxu0 %vm422_vm0, %v3500_v56 }
 0x932   : > { %v2963_v0 = vsel %vm2128_vm10, %v2959_v23, %v2961_v58  ;;  %3127 = vmatprep.mubr.f32.mxu0 %v5003_v33 }
 0x933   : > { %3503 = vmatprep.subr.msk.mxu1 %vm4655_vm6, %v2963_v0 }
 0x935   : > { %v3049_v54 = vpop.permute.xlu1 %3048  ;;  %v2957_v7 = vpop.permute.xlu0 %2956 }
 0x936   : > { %v2962_v4 = vsel %vm2128_vm10, %v2957_v7, %v2959_v23 }
 0x937   : > { %3504 = vmatpush1.msk.msra.mxu1 %vm4662_vm7, %v2962_v4 }
 0x938   : > { %3505 = vmatmul.mubr.msk.f32.vlgmr.msra.gmra.mxu1 %vm422_vm0, %v3502_v5 }
 0x939   : > { %v3047_v29 = vpop.permute.xlu1 %3046  ;;  %v3051_v2 = vpop.permute.xlu0 %3050  ;;  %3215 = vmatprep.mubr.f32.mxu1 %v5003_v33 }
 0x93a   : > { %v3052_v42 = vsel %vm2219_vm11, %v3047_v29, %v3049_v54  ;;  %v3053_v12 = vsel %vm2219_vm11, %v3049_v54, %v3051_v2 }
 0x93b   : > { %3507 = vmatprep.subr.msk.mxu0 %vm4598_vm2, %v3053_v12 }
 0x93c   : > { %3508 = vmatpush1.msk.msra.mxu0 %vm4606_vm3, %v3052_v42 }
 0x93d   : > { %v3143_v18 = vpop.permute.xlu1 %3142  ;;  %v3141_v61 = vpop.permute.xlu0 %3140  ;;  %3509 = vmatmul.mubr.msk.f32.vlgmr.msra.gmra.mxu0 %vm422_vm0, %v3506_v22 }
 0x93e   : > { %v3145_v21 = vsel %vm2312_vm12, %v3141_v61, %v3143_v18  ;;  %3305 = vmatprep.mubr.f32.mxu0 %v5003_v33  ;;  %v3512_v33 = vld [vmem:[%s4904_s10 + $0x40] sm:$0xff] }
 0x93f   : > { %3181 = vmatprep.subr.mxu1 %v3145_v21 }
 0x941   : > { %v3227_v3 = vpop.permute.xlu1 %3226  ;;  %v3139_v34 = vpop.permute.xlu0 %3138 }
 0x942   : > { %v3144_v13 = vsel %vm2312_vm12, %v3139_v34, %v3141_v61 }
 0x943   : > { %3182 = vmatpush1.msra.mxu1 %v3144_v13 }
 0x944   : > { %3511 = vmatmul.mubr.msk.f32.vlgmr.msra.gmra.mxu1 %vm422_vm0, %v3510_v8 }
 0x945   : > { %v3225_v20 = vpop.permute.xlu1 %3224  ;;  %v3229_v41 = vpop.permute.xlu0 %3228 }
 0x946   : > { %v3230_v55 = vsel %vm2399_vm13, %v3225_v20, %v3227_v3  ;;  %v3231_v51 = vsel %vm2399_vm13, %v3227_v3, %v3229_v41 }
 0x947   : > { %3513 = vmatprep.subr.msk.mxu0 %vm4655_vm6, %v3231_v51 }
 0x948   : > { %3514 = vmatpush1.msk.msra.mxu0 %vm4662_vm7, %v3230_v55 }
 0x949   : > { %3515 = vmatmul.mubr.msk.f32.vlgmr.msra.gmra.mxu0 %vm422_vm0, %v3512_v33 }
 0x952   : > { %v3318_v10 = vpop.permute.xlu0 %3317 }
 0x96a   : > { %v2683_v37 = vpop.f32.mrf.mxu1 }
 0x96c   : > { %v2685_v48 = vpop.f32.mrf.mxu1 }
 0x9e0   : > { %v2609_v6 = vpop.f32.mrf.mxu0 }
 0x9e1   : > { %v2684_v49 = vadd.f32 %v2683_v37, %v2609_v6 }
 0x9e2   : > { %v2611_v44 = vpop.f32.mrf.mxu0 }
 0x9e3   : > { %v2686_v38 = vadd.f32 %v2685_v48, %v2611_v44 }
 0x9e5   : > { %v2771_v62 = vpop.f32.mrf.mxu0 }
 0x9e6   : > { %v2776_v17 = vadd.f32 %v2771_v62, %v2684_v49 }
 0x9e7   : > { %v2773_v47 = vpop.f32.mrf.mxu0 }
 0x9e8   : > { %v2777_v25 = vadd.f32 %v2773_v47, %v2686_v38 }
 0x9ec   : > { %v2861_v15 = vpop.f32.mrf.mxu1 }
 0x9ed   : > { %v2866_v40 = vadd.f32 %v2861_v15, %v2776_v17 }
 0x9ee   : > { %v2863_v1 = vpop.f32.mrf.mxu1 }
 0x9ef   : > { %v2867_v24 = vadd.f32 %v2863_v1, %v2777_v25 }
 0x9f1   : > { %v2949_v63 = vpop.f32.mrf.mxu0 }
 0x9f2   : > { %v2954_v59 = vadd.f32 %v2949_v63, %v2866_v40 }
 0x9f3   : > { %v2951_v32 = vpop.f32.mrf.mxu0 }
 0x9f4   : > { %v2955_v31 = vadd.f32 %v2951_v32, %v2867_v24 }
 0x9f8   : > { %v3039_v16 = vpop.f32.mrf.mxu1 }
 0x9f9   : > { %v3044_v39 = vadd.f32 %v3039_v16, %v2954_v59 }
 0x9fa   : > { %v3041_v45 = vpop.f32.mrf.mxu1 }
 0x9fb   : > { %v3045_v27 = vadd.f32 %v3041_v45, %v2955_v31 }
 0x9fd   : > { %v3129_v26 = vpop.f32.mrf.mxu0 }
 0x9fe   : > { %v3134_v14 = vadd.f32 %v3129_v26, %v3044_v39 }
 0x9ff   : > { %v3131_v43 = vpop.f32.mrf.mxu0 }
 0xa00   : > { %v3135_v53 = vadd.f32 %v3131_v43, %v3045_v27 }
 0xa04   : > { %v3217_v11 = vpop.f32.mrf.mxu1 }
 0xa05   : > { %v3222_v50 = vadd.f32 %v3217_v11, %v3134_v14 }
 0xa06   : > { %v3219_v57 = vpop.f32.mrf.mxu1 }
 0xa07   : > { %v3223_v28 = vadd.f32 %v3219_v57, %v3135_v53 }
 0xa09   : > { %v3307_v60 = vpop.f32.mrf.mxu0 }
 0xa0a   : > { %v3312_v36 = vadd.f32 %v3307_v60, %v3222_v50 }
 0xa0b   : > { %v3309_v19 = vpop.f32.mrf.mxu0 }
 0xa0c   : > { %v3313_v30 = vadd.f32 %v3309_v19, %v3223_v28  ;;  %v3320_v52 = vadd.f32 %v3318_v10, %v3312_v36 }
 0xa0e   : > { %v3321_v46 = vadd.f32 %v3318_v10, %v3313_v30 }
 0xa10   : > { %v3322_v56 = vadd.f32 %v3321_v46, %v3320_v52 }
 0xa12   : > { %3323 = vadd.xlane.f32.xlu1 %v3322_v56 }
 0xa9b   : > { %v3324_v58 = vpop.xlane.xlu1 %3323 }
 0xa9c   : > { %v3325_v23 = vmul.f32 0.00390625, %v3324_v58 }
 0xa9e   : > { %v3326_v0 = vsub.f32 %v3320_v52, %v3325_v23  ;;  %v3327_v54 = vsub.f32 %v3321_v46, %v3325_v23 }
 0xaa0   : > { %v3328_v7 = vmul.f32 %v3326_v0, %v3326_v0  ;;  %v3329_v5 = vmul.f32 %v3327_v54, %v3327_v54 }
 0xaa2   : > { %v3330_v4 = vadd.f32 %v3329_v5, %v3328_v7 }
 0xaa4   : > { %3331 = vadd.xlane.f32.xlu0 %v3330_v4 }
 0xb2d   : > { %v3332_v29 = vpop.xlane.xlu0 %3331 }
 0xb2e   : > { %v3333_v2 = vmul.f32 0.00390625, %v3332_v29 }
 0xb30   : > { %v3334_v42 = vadd.f32 1e-05, %v3333_v2 }
 0xb32   : > { %3769 = vrsqrt.f32 %v3334_v42 }
 0xb3f   : > { %v3770_v12 = vpop.eup %3769 }
 0xb40   : > { %v3336_v22 = vmul.f32 %v3770_v12, %v3326_v0  ;;  %v3337_v18 = vmul.f32 %v3770_v12, %v3327_v54 }
 0xb42   : > { %v3338_v61 = vadd.f32 %v3336_v22, %v4579_v9  ;;  %v3339_v21 = vadd.f32 %v3337_v18, %v4582_v35 }
 0xb44   : > { %3340 = vst [vmem:[%s407_s21] sm:$0xff] %v3338_v61  ;;  %3341 = vst [vmem:[%s407_s21 + $0x8] sm:$0xff] %v3339_v21 }
 0xb45   : > { %3786 = shalt.err (!%p3783_p3)
}
 0xb46   : > { %s3787_s17 = scalar_lea.hbm %s4859_s18, 256  ;;  %s3791_s20 = scalar_lea.hbm %s4906_s12, 512 }
 0xb47   : > { %p3788_p4 = scmp.ne.s32.totalorder %s4859_s18, %s3787_s17  ;;  %p3792_p9 = scmp.lt.s32.totalorder %s4859_s18, %s4906_s12 }
 0xb48   : > { %p3793_p10 = scmp.lt.s32.totalorder %s3791_s20, %s3787_s17 }
 0xb49   : > { %p3789_p7 = pnand %p3788_p4, %p3953_p5 }
 0xb4a   : > { %p3794_p11 = por %p3793_p10, %p3792_p9 }
 0xb4b   : > { %p3790_p8 = pneg %p3789_p7 }
 0xb4d   : > { %p3795_p12 = pnand %p3794_p11, %p3790_p8 }
 0xb4f   : > { %3798 = shalt.err (!%p3795_p12)
}
 0xb50   : > { %3523 = dma.vmem_to_hbm [thread:$0]  (%p3953_p5), %s3358_s19, 256, %s4859_s18, %s3343_s30  }
 0xb51 PF: > { %p3529_p13 = scmp.ge.s32.totalorder %s3833_s26, 2  ;;  %s3369_s1 = sand.u32 1, %s3821_s23  }
 0xb52   : > { %s3370_s27 = scalar_lea.sflag [#allocation4], %s3369_s1 }
 0xb53   : > { %p3526_p0 = pnand %p3529_p13, %p3957_p6 }
 0xb55   : > { %p3527_p1 = pneg %p3526_p0 }
 0xb57   : > { %3816 = dma.done.wait (%p3527_p1), %s3370_s27, 256  }
 0xb58   : > { %3818 = vsyncadd (%p3527_p1), %s3370_s27, 4294967040  ;;  %p23_p2 = scmp.ge.s32.totalorder %s3940_s28, 4   ;;  %s5015_s23 = smov %s3825_s24 }
 0xb59   : > { %s5016_s24 = smov %s3829_s25  ;;  %s5017_s25 = smov %s3951_s13 }
 0xb5a   : > { %s5018_s26 = smov %s3940_s28  ;;  %25 = sbr.rel (!%p23_p2) target bundleno = 6 (0x6), region = 119 }
 0xb5f   :  { %3375 = vsyncpa [#allocation4], 1 }
 0xb60   :  { %3377 = vsyncpa [#allocation4 + $0x1], 1 }

</bundles_post_ra>
